<compile_context>
chip_gen: v7x
topology: tpu7x:2x2x1
jax: 0.10.0
libtpu: 0.0.40
codegen_flags: <defaults>
</compile_context>

<pallas_src>
import functools

import jax
import jax.numpy as jnp
from jax.experimental import pallas as pl
from jax.experimental.pallas import tpu as pltpu


# ----------------------------------------------------------------------------
# Pallas kernel: per-pixel ray gather + trilinear interpolation + ray sum
# ----------------------------------------------------------------------------
def _prost_gather_kernel(steps, tile_px,
                         starts_ref, wts_ref, vol_ref, out_ref, acc_ref):
    # starts_ref : SMEM int32 (3*steps, H*W)   cube origins (z, y, x)
    # wts_ref    : SMEM f32   (8*steps, H*W)   trilinear corner weights (oob-zeroed)
    # vol_ref    : VMEM f32   (D, Hv, Wv, C)   CT volume, resident across grid steps
    # out_ref    : VMEM f32   (C, tile_px)     lane-dense output block
    # acc_ref    : VMEM f32   (tile_px, C)     per-pixel accumulator (sublane stores)
    C = vol_ref.shape[3]
    base = pl.program_id(0) * tile_px

    def per_pixel(p, carry):
        pix = base + p
        val = jnp.zeros((1, C), dtype=jnp.float32)
        for s in range(steps):                       # static unroll over ray samples
            iz = starts_ref[s, pix]
            iy = starts_ref[steps + s, pix]
            ix = starts_ref[2 * steps + s, pix]
            # One dynamic slice grabs the whole 2x2x2xC neighbourhood; the
            # dynamically indexed axes (D, Hv, Wv) are leading/sublane axes.
            cube = vol_ref[pl.ds(iz, 2), pl.ds(iy, 2), pl.ds(ix, 2), :]
            k = 0
            for dz in range(2):
                for dy in range(2):
                    for dx in range(2):
                        w = wts_ref[k * steps + s, pix]      # SMEM scalar weight
                        val = val + w * cube[dz, dy, dx:dx + 1, :]
                        k += 1
        acc_ref[pl.ds(p, 1), :] = val                # dynamic-sublane store
        return carry

    jax.lax.fori_loop(0, tile_px, per_pixel, 0)
    # Small (tile_px, C) -> (C, tile_px) relayout so the output block (and its
    # HBM writeback) is lane-dense.
    out_ref[...] = jnp.transpose(acc_ref[...])


def _precompute_gather(ray_grid, tmat3x4, D, Hv, Wv, H, W, steps):
    """Projection + trilinear setup (plain JAX, cheap O(N) elementwise).

    Returns int32 cube origins (3*steps, H*W) and f32 corner weights
    (8*steps, H*W), matching torch's clamp / out-of-bounds semantics.
    """
    HW = H * W
    g = ray_grid.reshape(HW, steps, 4).astype(jnp.float32)
    T = tmat3x4[0].astype(jnp.float32)                       # (3, 4)
    pts = jnp.einsum('psk,jk->psj', g, T)                    # (HW, steps, 3)

    x = Wv * (pts[..., 0] * 0.5 + 0.5)
    y = Hv * (pts[..., 1] * 0.5 + 0.5)
    z = D * (pts[..., 2] * 0.5 + 0.5)
    valid = ((x >= 0) & (x <= Wv) & (y >= 0) & (y <= Hv)
             & (z >= 0) & (z <= D)).astype(jnp.float32)

    x0 = jnp.floor(x); y0 = jnp.floor(y); z0 = jnp.floor(z)
    # clamped corner coordinates (torch.clamp semantics)
    x0c = jnp.clip(x0, 0.0, Wv - 1.0); x1c = jnp.clip(x0 + 1.0, 0.0, Wv - 1.0)
    y0c = jnp.clip(y0, 0.0, Hv - 1.0); y1c = jnp.clip(y0 + 1.0, 0.0, Hv - 1.0)
    z0c = jnp.clip(z0, 0.0, D - 1.0);  z1c = jnp.clip(z0 + 1.0, 0.0, D - 1.0)
    # integer 2x2x2 cube origin, always fully inside the volume
    sx = jnp.clip(x0, 0.0, Wv - 2.0).astype(jnp.int32)
    sy = jnp.clip(y0, 0.0, Hv - 2.0).astype(jnp.int32)
    sz = jnp.clip(z0, 0.0, D - 2.0).astype(jnp.int32)

    def slot_weights(c0, c1, w0, w1, start):
        # distribute the two (possibly clamped-together) corner weights onto the
        # two cube slots along one axis
        o0 = c0.astype(jnp.int32) - start
        o1 = c1.astype(jnp.int32) - start
        a0 = w0 * (o0 == 0) + w1 * (o1 == 0)
        a1 = w0 * (o0 == 1) + w1 * (o1 == 1)
        return a0, a1

    ax = slot_weights(x0c, x1c, (x0 + 1.0) - x, x - x0, sx)
    ay = slot_weights(y0c, y1c, (y0 + 1.0) - y, y - y0, sy)
    az = slot_weights(z0c, z1c, (z0 + 1.0) - z, z - z0, sz)

    # corner k = dz*4 + dy*2 + dx, oob samples zeroed here (not on a (N,V) mask)
    wts = jnp.stack([az[dz] * ay[dy] * ax[dx] * valid
                     for dz in range(2) for dy in range(2) for dx in range(2)])
    starts = jnp.stack([sz, sy, sx])                         # (3, HW, steps)

    # (-, HW, steps) -> (-*steps, HW): pixels on the (lane-aligned) last axis,
    # rows padded benignly in SMEM.
    wts = jnp.transpose(wts, (0, 2, 1)).reshape(8 * steps, HW)
    starts = jnp.transpose(starts, (0, 2, 1)).reshape(3 * steps, HW)
    return starts.astype(jnp.int32), wts.astype(jnp.float32)


def prost_pallas(tmat3x4, ray_grid, ct, H, W, steps):
    nb, C, D, Hv, Wv = ct.shape
    assert nb == 1, "kernel assumes batch 1 (ProST forward uses set_matrix(1, ...))"
    assert D >= 2 and Hv >= 2 and Wv >= 2
    HW = H * W
    tile_px = 128 if HW % 128 == 0 else HW
    assert HW % tile_px == 0

    starts, wts = _precompute_gather(ray_grid, tmat3x4, D, Hv, Wv, H, W, steps)
    # Channel-last volume: the per-sample (2,2,2,C) cube is a single dynamic
    # slice whose dynamic axes are leading/sublane dims (never the lane dim).
    vol = jnp.transpose(ct[0], (1, 2, 3, 0)).astype(jnp.float32)   # (D, Hv, Wv, C)

    kern = functools.partial(_prost_gather_kernel, steps, tile_px)
    out = pl.pallas_call(
        kern,
        out_shape=jax.ShapeDtypeStruct((C, HW), jnp.float32),
        grid=(HW // tile_px,),
        in_specs=[
            pl.BlockSpec(memory_space=pltpu.MemorySpace.SMEM),       # cube origins
            pl.BlockSpec(memory_space=pltpu.MemorySpace.SMEM),       # corner weights
            pl.BlockSpec((D, Hv, Wv, C), lambda i: (0, 0, 0, 0)),    # volume resident
        ],
        out_specs=pl.BlockSpec((C, tile_px), lambda i: (0, i)),
        scratch_shapes=[pltpu.VMEM((tile_px, C), jnp.float32)],
        compiler_params=pltpu.CompilerParams(
            dimension_semantics=("parallel",),
            vmem_limit_bytes=32 * 1024 * 1024),
    )(starts, wts, vol)

    # (C, H*W) is already lane-dense and reshapes straight to NCHW.
    return out.reshape(1, C, H, W)


# ----------------------------------------------------------------------------
# Plain-JAX glue (parameter/matrix setup — mirrors the torch helpers)
# ----------------------------------------------------------------------------
def set_matrix_jax(pose):
    rx, ry, rz = pose[0, 0], pose[0, 1], pose[0, 2]
    xm, ym, zm = pose[0, 3], pose[0, 4], pose[0, 5]
    one = jnp.float32(1.0)
    zero = jnp.float32(0.0)
    cx, sx = jnp.cos(rx), jnp.sin(rx)
    cy, sy = jnp.cos(ry), jnp.sin(ry)
    cz, sz = jnp.cos(rz), jnp.sin(rz)

    Rx = jnp.stack([jnp.stack([one, zero, zero, zero]),
                    jnp.stack([zero, cx, -sx, zero]),
                    jnp.stack([zero, sx, cx, zero]),
                    jnp.stack([zero, zero, zero, one])])
    Ry = jnp.stack([jnp.stack([cy, zero, sy, zero]),
                    jnp.stack([zero, one, zero, zero]),
                    jnp.stack([-sy, zero, cy, zero]),
                    jnp.stack([zero, zero, zero, one])])
    Rz = jnp.stack([jnp.stack([cz, -sz, zero, zero]),
                    jnp.stack([sz, cz, zero, zero]),
                    jnp.stack([zero, zero, one, zero]),
                    jnp.stack([zero, zero, zero, one])])
    Tr = jnp.stack([jnp.stack([one, zero, zero, xm]),
                    jnp.stack([zero, one, zero, ym]),
                    jnp.stack([zero, zero, one, zm]),
                    jnp.stack([zero, zero, zero, one])])
    M = Rz @ Ry @ Rx @ Tr
    return M[None, :3, :]            # (1, 3, 4)


def raydist_range_jax(transform_mat, pt, src):
    t = transform_mat[:, :3, 3]                       # (1, 3)
    p = pt - t[:, None, :]                            # (1, 8, 3)
    R = transform_mat[:, :3, :3]
    invR = jnp.linalg.inv(R)
    inv_pt = jnp.einsum('bij,bjk->bik', p, invR)      # pt.bmm(invR)
    inv_pt = inv_pt.at[:, :, 2].set(src - inv_pt[:, :, 2])
    d = jnp.sqrt(jnp.sum(inv_pt * inv_pt, axis=-1))
    return jnp.min(d), jnp.max(d)


def prost_grid_approx(corner_pt, H, W, steps, dist_min, dist_max, src, det,
                      pix_spacing):
    # TODO(synk): ProSTGrid.forward is an external CUDA extension (not available);
    # this is a faithful-in-spirit cone-beam ray-sampling grid (source at
    # (0,0,src), detector plane at z=src-det, `steps` samples between
    # dist_min and dist_max along each ray, homogeneous coordinate appended).
    ys = (jnp.arange(H, dtype=jnp.float32) - (H - 1) / 2.0) * pix_spacing
    xs = (jnp.arange(W, dtype=jnp.float32) - (W - 1) / 2.0) * pix_spacing
    dy, dx = jnp.meshgrid(ys, xs, indexing='ij')                  # (H, W)
    dirs = jnp.stack([dx, dy, jnp.full_like(dx, -det)], axis=-1)  # (H, W, 3)
    dirs = dirs / jnp.linalg.norm(dirs, axis=-1, keepdims=True)
    ts = dist_min + (dist_max - dist_min) * (jnp.arange(steps, dtype=jnp.float32) + 0.5) / steps
    src_pt = jnp.stack([jnp.float32(0.0), jnp.float32(0.0), src])
    pts = src_pt + dirs[:, :, None, :] * ts[None, None, :, None]  # (H, W, steps, 3)
    ext = jnp.max(jnp.abs(corner_pt)) + 1e-6
    pts = pts / ext
    ones = jnp.ones(pts.shape[:-1] + (1,), dtype=jnp.float32)
    grid = jnp.concatenate([pts, ones], axis=-1)
    return grid.reshape(1, H * W * steps, 4)


def prost_forward(ct, fixed, pose, corner_pt, param, H, W, steps=8):
    src, det, pix_spacing, _step_size = param[0], param[1], param[2], param[3]
    del fixed  # only its size is used in the original (H, W passed explicitly)
    transform_mat3x4 = set_matrix_jax(pose)
    dist_min, dist_max = raydist_range_jax(transform_mat3x4, corner_pt, src)
    ray_grid = prost_grid_approx(corner_pt, H, W, steps, dist_min, dist_max,
                                 src, det, pix_spacing)
    return prost_pallas(transform_mat3x4, ray_grid, ct, H, W, steps)


# ----------------------------------------------------------------------------
# Pure-JAX reference (mirrors _bilinear_interpolate_no_torch_5D) for checking
# ----------------------------------------------------------------------------
def _bilinear_interpolate_ref(vol, grid):
    nb, C, D_, Hh, Ww = vol.shape
    volp = jnp.transpose(vol, (0, 2, 3, 4, 1)).reshape(-1, C)
    _, od, oh, ow, _ = grid.shape
    x = (Ww * (grid[..., 0] * 0.5 + 0.5)).reshape(-1)
    y = (Hh * (grid[..., 1] * 0.5 + 0.5)).reshape(-1)
    z = (D_ * (grid[..., 2] * 0.5 + 0.5)).reshape(-1)
    ind = jnp.logical_not((x >= 0) & (x <= Ww) & (y >= 0) & (y <= Hh)
                          & (z >= 0) & (z <= D_))
    x0 = jnp.floor(x); x1 = x0 + 1
    y0 = jnp.floor(y); y1 = y0 + 1
    z0 = jnp.floor(z); z1 = z0 + 1
    x0c = jnp.clip(x0, 0, Ww - 1); x1c = jnp.clip(x1, 0, Ww - 1)
    y0c = jnp.clip(y0, 0, Hh - 1); y1c = jnp.clip(y1, 0, Hh - 1)
    z0c = jnp.clip(z0, 0, D_ - 1); z1c = jnp.clip(z1, 0, D_ - 1)
    dim3 = float(Ww); dim2 = float(Ww * Hh)

    def gat(zc, yc, xc):
        idx = ((zc * dim2).astype(jnp.int32) + (yc * dim3).astype(jnp.int32)
               + xc.astype(jnp.int32))
        return volp[idx]

    wa = ((x1 - x) * (y1 - y) * (z1 - z))[:, None]
    wb = ((x - x0) * (y1 - y) * (z1 - z))[:, None]
    wc = ((x1 - x) * (y - y0) * (z1 - z))[:, None]
    wd = ((x - x0) * (y - y0) * (z1 - z))[:, None]
    we = ((x1 - x) * (y1 - y) * (z - z0))[:, None]
    wf = ((x - x0) * (y1 - y) * (z - z0))[:, None]
    wg = ((x1 - x) * (y - y0) * (z - z0))[:, None]
    wh = ((x - x0) * (y - y0) * (z - z0))[:, None]
    out = (wa * gat(z0c, y0c, x0c) + wb * gat(z0c, y0c, x1c)
           + wc * gat(z0c, y1c, x0c) + wd * gat(z0c, y1c, x1c)
           + we * gat(z1c, y0c, x0c) + wf * gat(z1c, y0c, x1c)
           + wg * gat(z1c, y1c, x0c) + wh * gat(z1c, y1c, x1c))
    out = jnp.where(ind[:, None], 0.0, out)
    out = out.reshape(nb, od, oh, ow, C)
    return jnp.transpose(out, (0, 4, 1, 2, 3))


def prost_forward_ref(ct, pose, corner_pt, param, H, W, steps=8):
    src, det, pix_spacing, _ = param[0], param[1], param[2], param[3]
    T = set_matrix_jax(pose)
    dmin, dmax = raydist_range_jax(T, corner_pt, src)
    grid = prost_grid_approx(corner_pt, H, W, steps, dmin, dmax, src, det,
                             pix_spacing)
    grid_trans = (grid @ jnp.swapaxes(T, 1, 2)).reshape(1, H, W, steps, 3)
    x_3d = _bilinear_interpolate_ref(ct, grid_trans)
    return jnp.sum(x_3d, axis=-1)


# ----------------------------------------------------------------------------
if __name__ == "__main__":
    key = jax.random.PRNGKey(0)
    k_ct, = jax.random.split(key, 1)

    B, C = 1, 4
    D, Hv, Wv = 16, 16, 16        # CT volume spatial dims
    H, W = 16, 16                 # detector size (H*W = 256 -> 2 pixel tiles)
    STEPS = 8                     # samples per ray

    ct = jax.random.normal(k_ct, (B, C, D, Hv, Wv), dtype=jnp.float32)
    fixed = jnp.zeros((B, 1, H, W), dtype=jnp.float32)
    pose = jnp.array([[0.10, -0.05, 0.08, 0.02, -0.03, 0.01]], dtype=jnp.float32)
    # cube corners at +/-1 (normalized CT extent)
    cs = jnp.array([-1.0, 1.0], dtype=jnp.float32)
    corner_pt = jnp.stack(jnp.meshgrid(cs, cs, cs, indexing='ij'),
                          axis=-1).reshape(1, 8, 3)
    param = jnp.array([4.0, 8.0, 0.25, 0.1], dtype=jnp.float32)  # src, det, pix_spacing, step_size

    moving = prost_forward(ct, fixed, pose, corner_pt, param, H, W, steps=STEPS)
    moving = jax.block_until_ready(moving)

    moving_ref = prost_forward_ref(ct, pose, corner_pt, param, H, W, steps=STEPS)
    moving_ref = jax.block_until_ready(moving_ref)

    assert moving.shape == (1, C, H, W)
    max_err = float(jnp.max(jnp.abs(moving - moving_ref)))
    assert jnp.allclose(moving, moving_ref, atol=1e-3, rtol=1e-3), max_err
    print("KERNEL_OK")
</pallas_src>

<mosaic_0001>
module attributes {stable_mosaic.version = 11 : i64} {
  func.func @_prost_gather_kernel(%arg0: i32, %arg1: memref<24x256xi32, #tpu.memory_space<smem>>, %arg2: memref<64x256xf32, #tpu.memory_space<smem>>, %arg3: memref<16x16x16x4xf32, #tpu.memory_space<vmem>>, %arg4: memref<4x128xf32, #tpu.memory_space<vmem>>, %arg5: memref<128x4xf32, #tpu.memory_space<vmem>>) attributes {dimension_semantics = [#tpu.dimension_semantics<parallel>], iteration_bounds = array<i64: 2>, scalar_prefetch = 0 : i64, scratch_operands = 1 : i64, tpu.core_type = #tpu.core_type<tc>, window_params = [{transform_indices = @transform_0, window_bounds = array<i64: 24, 256>}, {transform_indices = @transform_1, window_bounds = array<i64: 64, 256>}, {pipeline_mode = #tpu.pipeline_mode<synchronous>, transform_indices = @transform_2, window_bounds = array<i64: 16, 16, 16, 4>}, {transform_indices = @transform_3, window_bounds = array<i64: 4, 128>}]} {
    %c128_i32 = arith.constant 128 : i32
    %0 = arith.muli %arg0, %c128_i32 : i32
    %c0_i32 = arith.constant 0 : i32
    %c128_i32_0 = arith.constant 128 : i32
    %1 = arith.addi %c0_i32, %c128_i32_0 : i32
    %c1_i32 = arith.constant 1 : i32
    scf.for %arg6 = %c0_i32 to %1 step %c1_i32  : i32 {
      %5 = arith.addi %0, %arg6 : i32
      %cst = arith.constant 0.000000e+00 : f32
      %6 = vector.broadcast %cst : f32 to vector<1x4xf32>
      %c0_5 = arith.constant 0 : index
      %7 = arith.index_cast %5 : i32 to index
      %8 = memref.load %arg1[%c0_5, %7] : memref<24x256xi32, #tpu.memory_space<smem>>
      %c8 = arith.constant 8 : index
      %9 = arith.index_cast %5 : i32 to index
      %10 = memref.load %arg1[%c8, %9] : memref<24x256xi32, #tpu.memory_space<smem>>
      %c16 = arith.constant 16 : index
      %11 = arith.index_cast %5 : i32 to index
      %12 = memref.load %arg1[%c16, %11] : memref<24x256xi32, #tpu.memory_space<smem>>
      %13 = arith.index_cast %8 : i32 to index
      %14 = arith.index_cast %10 : i32 to index
      %15 = arith.index_cast %12 : i32 to index
      %c0_6 = arith.constant 0 : index
      %16 = vector.load %arg3[%13, %14, %15, %c0_6] : memref<16x16x16x4xf32, #tpu.memory_space<vmem>>, vector<2x2x2x4xf32>
      %c0_7 = arith.constant 0 : index
      %17 = arith.index_cast %5 : i32 to index
      %18 = memref.load %arg2[%c0_7, %17] : memref<64x256xf32, #tpu.memory_space<smem>>
      %19 = vector.extract_strided_slice %16 {offsets = [0, 0, 0, 0], sizes = [1, 1, 1, 4], strides = [1, 1, 1, 1]} : vector<2x2x2x4xf32> to vector<1x1x1x4xf32>
      %20 = vector.shape_cast %19 : vector<1x1x1x4xf32> to vector<1x4xf32>
      %21 = vector.broadcast %18 : f32 to vector<1x4xf32>
      %22 = arith.mulf %21, %20 : vector<1x4xf32>
      %23 = arith.addf %6, %22 : vector<1x4xf32>
      %c8_8 = arith.constant 8 : index
      %24 = arith.index_cast %5 : i32 to index
      %25 = memref.load %arg2[%c8_8, %24] : memref<64x256xf32, #tpu.memory_space<smem>>
      %26 = vector.extract_strided_slice %16 {offsets = [0, 0, 1, 0], sizes = [1, 1, 1, 4], strides = [1, 1, 1, 1]} : vector<2x2x2x4xf32> to vector<1x1x1x4xf32>
      %27 = vector.shape_cast %26 : vector<1x1x1x4xf32> to vector<1x4xf32>
      %28 = vector.broadcast %25 : f32 to vector<1x4xf32>
      %29 = arith.mulf %28, %27 : vector<1x4xf32>
      %30 = arith.addf %23, %29 : vector<1x4xf32>
      %c16_9 = arith.constant 16 : index
      %31 = arith.index_cast %5 : i32 to index
      %32 = memref.load %arg2[%c16_9, %31] : memref<64x256xf32, #tpu.memory_space<smem>>
      %33 = vector.extract_strided_slice %16 {offsets = [0, 1, 0, 0], sizes = [1, 1, 1, 4], strides = [1, 1, 1, 1]} : vector<2x2x2x4xf32> to vector<1x1x1x4xf32>
      %34 = vector.shape_cast %33 : vector<1x1x1x4xf32> to vector<1x4xf32>
      %35 = vector.broadcast %32 : f32 to vector<1x4xf32>
      %36 = arith.mulf %35, %34 : vector<1x4xf32>
      %37 = arith.addf %30, %36 : vector<1x4xf32>
      %c24 = arith.constant 24 : index
      %38 = arith.index_cast %5 : i32 to index
      %39 = memref.load %arg2[%c24, %38] : memref<64x256xf32, #tpu.memory_space<smem>>
      %40 = vector.extract_strided_slice %16 {offsets = [0, 1, 1, 0], sizes = [1, 1, 1, 4], strides = [1, 1, 1, 1]} : vector<2x2x2x4xf32> to vector<1x1x1x4xf32>
      %41 = vector.shape_cast %40 : vector<1x1x1x4xf32> to vector<1x4xf32>
      %42 = vector.broadcast %39 : f32 to vector<1x4xf32>
      %43 = arith.mulf %42, %41 : vector<1x4xf32>
      %44 = arith.addf %37, %43 : vector<1x4xf32>
      %c32 = arith.constant 32 : index
      %45 = arith.index_cast %5 : i32 to index
      %46 = memref.load %arg2[%c32, %45] : memref<64x256xf32, #tpu.memory_space<smem>>
      %47 = vector.extract_strided_slice %16 {offsets = [1, 0, 0, 0], sizes = [1, 1, 1, 4], strides = [1, 1, 1, 1]} : vector<2x2x2x4xf32> to vector<1x1x1x4xf32>
      %48 = vector.shape_cast %47 : vector<1x1x1x4xf32> to vector<1x4xf32>
      %49 = vector.broadcast %46 : f32 to vector<1x4xf32>
      %50 = arith.mulf %49, %48 : vector<1x4xf32>
      %51 = arith.addf %44, %50 : vector<1x4xf32>
      %c40 = arith.constant 40 : index
      %52 = arith.index_cast %5 : i32 to index
      %53 = memref.load %arg2[%c40, %52] : memref<64x256xf32, #tpu.memory_space<smem>>
      %54 = vector.extract_strided_slice %16 {offsets = [1, 0, 1, 0], sizes = [1, 1, 1, 4], strides = [1, 1, 1, 1]} : vector<2x2x2x4xf32> to vector<1x1x1x4xf32>
      %55 = vector.shape_cast %54 : vector<1x1x1x4xf32> to vector<1x4xf32>
      %56 = vector.broadcast %53 : f32 to vector<1x4xf32>
      %57 = arith.mulf %56, %55 : vector<1x4xf32>
      %58 = arith.addf %51, %57 : vector<1x4xf32>
      %c48 = arith.constant 48 : index
      %59 = arith.index_cast %5 : i32 to index
      %60 = memref.load %arg2[%c48, %59] : memref<64x256xf32, #tpu.memory_space<smem>>
      %61 = vector.extract_strided_slice %16 {offsets = [1, 1, 0, 0], sizes = [1, 1, 1, 4], strides = [1, 1, 1, 1]} : vector<2x2x2x4xf32> to vector<1x1x1x4xf32>
      %62 = vector.shape_cast %61 : vector<1x1x1x4xf32> to vector<1x4xf32>
      %63 = vector.broadcast %60 : f32 to vector<1x4xf32>
      %64 = arith.mulf %63, %62 : vector<1x4xf32>
      %65 = arith.addf %58, %64 : vector<1x4xf32>
      %c56 = arith.constant 56 : index
      %66 = arith.index_cast %5 : i32 to index
      %67 = memref.load %arg2[%c56, %66] : memref<64x256xf32, #tpu.memory_space<smem>>
      %68 = vector.extract_strided_slice %16 {offsets = [1, 1, 1, 0], sizes = [1, 1, 1, 4], strides = [1, 1, 1, 1]} : vector<2x2x2x4xf32> to vector<1x1x1x4xf32>
      %69 = vector.shape_cast %68 : vector<1x1x1x4xf32> to vector<1x4xf32>
      %70 = vector.broadcast %67 : f32 to vector<1x4xf32>
      %71 = arith.mulf %70, %69 : vector<1x4xf32>
      %72 = arith.addf %65, %71 : vector<1x4xf32>
      %c1 = arith.constant 1 : index
      %73 = arith.index_cast %5 : i32 to index
      %74 = memref.load %arg1[%c1, %73] : memref<24x256xi32, #tpu.memory_space<smem>>
      %c9 = arith.constant 9 : index
      %75 = arith.index_cast %5 : i32 to index
      %76 = memref.load %arg1[%c9, %75] : memref<24x256xi32, #tpu.memory_space<smem>>
      %c17 = arith.constant 17 : index
      %77 = arith.index_cast %5 : i32 to index
      %78 = memref.load %arg1[%c17, %77] : memref<24x256xi32, #tpu.memory_space<smem>>
      %79 = arith.index_cast %74 : i32 to index
      %80 = arith.index_cast %76 : i32 to index
      %81 = arith.index_cast %78 : i32 to index
      %c0_10 = arith.constant 0 : index
      %82 = vector.load %arg3[%79, %80, %81, %c0_10] : memref<16x16x16x4xf32, #tpu.memory_space<vmem>>, vector<2x2x2x4xf32>
      %c1_11 = arith.constant 1 : index
      %83 = arith.index_cast %5 : i32 to index
      %84 = memref.load %arg2[%c1_11, %83] : memref<64x256xf32, #tpu.memory_space<smem>>
      %85 = vector.extract_strided_slice %82 {offsets = [0, 0, 0, 0], sizes = [1, 1, 1, 4], strides = [1, 1, 1, 1]} : vector<2x2x2x4xf32> to vector<1x1x1x4xf32>
      %86 = vector.shape_cast %85 : vector<1x1x1x4xf32> to vector<1x4xf32>
      %87 = vector.broadcast %84 : f32 to vector<1x4xf32>
      %88 = arith.mulf %87, %86 : vector<1x4xf32>
      %89 = arith.addf %72, %88 : vector<1x4xf32>
      %c9_12 = arith.constant 9 : index
      %90 = arith.index_cast %5 : i32 to index
      %91 = memref.load %arg2[%c9_12, %90] : memref<64x256xf32, #tpu.memory_space<smem>>
      %92 = vector.extract_strided_slice %82 {offsets = [0, 0, 1, 0], sizes = [1, 1, 1, 4], strides = [1, 1, 1, 1]} : vector<2x2x2x4xf32> to vector<1x1x1x4xf32>
      %93 = vector.shape_cast %92 : vector<1x1x1x4xf32> to vector<1x4xf32>
      %94 = vector.broadcast %91 : f32 to vector<1x4xf32>
      %95 = arith.mulf %94, %93 : vector<1x4xf32>
      %96 = arith.addf %89, %95 : vector<1x4xf32>
      %c17_13 = arith.constant 17 : index
      %97 = arith.index_cast %5 : i32 to index
      %98 = memref.load %arg2[%c17_13, %97] : memref<64x256xf32, #tpu.memory_space<smem>>
      %99 = vector.extract_strided_slice %82 {offsets = [0, 1, 0, 0], sizes = [1, 1, 1, 4], strides = [1, 1, 1, 1]} : vector<2x2x2x4xf32> to vector<1x1x1x4xf32>
      %100 = vector.shape_cast %99 : vector<1x1x1x4xf32> to vector<1x4xf32>
      %101 = vector.broadcast %98 : f32 to vector<1x4xf32>
      %102 = arith.mulf %101, %100 : vector<1x4xf32>
      %103 = arith.addf %96, %102 : vector<1x4xf32>
      %c25 = arith.constant 25 : index
      %104 = arith.index_cast %5 : i32 to index
      %105 = memref.load %arg2[%c25, %104] : memref<64x256xf32, #tpu.memory_space<smem>>
      %106 = vector.extract_strided_slice %82 {offsets = [0, 1, 1, 0], sizes = [1, 1, 1, 4], strides = [1, 1, 1, 1]} : vector<2x2x2x4xf32> to vector<1x1x1x4xf32>
      %107 = vector.shape_cast %106 : vector<1x1x1x4xf32> to vector<1x4xf32>
      %108 = vector.broadcast %105 : f32 to vector<1x4xf32>
      %109 = arith.mulf %108, %107 : vector<1x4xf32>
      %110 = arith.addf %103, %109 : vector<1x4xf32>
      %c33 = arith.constant 33 : index
      %111 = arith.index_cast %5 : i32 to index
      %112 = memref.load %arg2[%c33, %111] : memref<64x256xf32, #tpu.memory_space<smem>>
      %113 = vector.extract_strided_slice %82 {offsets = [1, 0, 0, 0], sizes = [1, 1, 1, 4], strides = [1, 1, 1, 1]} : vector<2x2x2x4xf32> to vector<1x1x1x4xf32>
      %114 = vector.shape_cast %113 : vector<1x1x1x4xf32> to vector<1x4xf32>
      %115 = vector.broadcast %112 : f32 to vector<1x4xf32>
      %116 = arith.mulf %115, %114 : vector<1x4xf32>
      %117 = arith.addf %110, %116 : vector<1x4xf32>
      %c41 = arith.constant 41 : index
      %118 = arith.index_cast %5 : i32 to index
      %119 = memref.load %arg2[%c41, %118] : memref<64x256xf32, #tpu.memory_space<smem>>
      %120 = vector.extract_strided_slice %82 {offsets = [1, 0, 1, 0], sizes = [1, 1, 1, 4], strides = [1, 1, 1, 1]} : vector<2x2x2x4xf32> to vector<1x1x1x4xf32>
      %121 = vector.shape_cast %120 : vector<1x1x1x4xf32> to vector<1x4xf32>
      %122 = vector.broadcast %119 : f32 to vector<1x4xf32>
      %123 = arith.mulf %122, %121 : vector<1x4xf32>
      %124 = arith.addf %117, %123 : vector<1x4xf32>
      %c49 = arith.constant 49 : index
      %125 = arith.index_cast %5 : i32 to index
      %126 = memref.load %arg2[%c49, %125] : memref<64x256xf32, #tpu.memory_space<smem>>
      %127 = vector.extract_strided_slice %82 {offsets = [1, 1, 0, 0], sizes = [1, 1, 1, 4], strides = [1, 1, 1, 1]} : vector<2x2x2x4xf32> to vector<1x1x1x4xf32>
      %128 = vector.shape_cast %127 : vector<1x1x1x4xf32> to vector<1x4xf32>
      %129 = vector.broadcast %126 : f32 to vector<1x4xf32>
      %130 = arith.mulf %129, %128 : vector<1x4xf32>
      %131 = arith.addf %124, %130 : vector<1x4xf32>
      %c57 = arith.constant 57 : index
      %132 = arith.index_cast %5 : i32 to index
      %133 = memref.load %arg2[%c57, %132] : memref<64x256xf32, #tpu.memory_space<smem>>
      %134 = vector.extract_strided_slice %82 {offsets = [1, 1, 1, 0], sizes = [1, 1, 1, 4], strides = [1, 1, 1, 1]} : vector<2x2x2x4xf32> to vector<1x1x1x4xf32>
      %135 = vector.shape_cast %134 : vector<1x1x1x4xf32> to vector<1x4xf32>
      %136 = vector.broadcast %133 : f32 to vector<1x4xf32>
      %137 = arith.mulf %136, %135 : vector<1x4xf32>
      %138 = arith.addf %131, %137 : vector<1x4xf32>
      %c2 = arith.constant 2 : index
      %139 = arith.index_cast %5 : i32 to index
      %140 = memref.load %arg1[%c2, %139] : memref<24x256xi32, #tpu.memory_space<smem>>
      %c10 = arith.constant 10 : index
      %141 = arith.index_cast %5 : i32 to index
      %142 = memref.load %arg1[%c10, %141] : memref<24x256xi32, #tpu.memory_space<smem>>
      %c18 = arith.constant 18 : index
      %143 = arith.index_cast %5 : i32 to index
      %144 = memref.load %arg1[%c18, %143] : memref<24x256xi32, #tpu.memory_space<smem>>
      %145 = arith.index_cast %140 : i32 to index
      %146 = arith.index_cast %142 : i32 to index
      %147 = arith.index_cast %144 : i32 to index
      %c0_14 = arith.constant 0 : index
      %148 = vector.load %arg3[%145, %146, %147, %c0_14] : memref<16x16x16x4xf32, #tpu.memory_space<vmem>>, vector<2x2x2x4xf32>
      %c2_15 = arith.constant 2 : index
      %149 = arith.index_cast %5 : i32 to index
      %150 = memref.load %arg2[%c2_15, %149] : memref<64x256xf32, #tpu.memory_space<smem>>
      %151 = vector.extract_strided_slice %148 {offsets = [0, 0, 0, 0], sizes = [1, 1, 1, 4], strides = [1, 1, 1, 1]} : vector<2x2x2x4xf32> to vector<1x1x1x4xf32>
      %152 = vector.shape_cast %151 : vector<1x1x1x4xf32> to vector<1x4xf32>
      %153 = vector.broadcast %150 : f32 to vector<1x4xf32>
      %154 = arith.mulf %153, %152 : vector<1x4xf32>
      %155 = arith.addf %138, %154 : vector<1x4xf32>
      %c10_16 = arith.constant 10 : index
      %156 = arith.index_cast %5 : i32 to index
      %157 = memref.load %arg2[%c10_16, %156] : memref<64x256xf32, #tpu.memory_space<smem>>
      %158 = vector.extract_strided_slice %148 {offsets = [0, 0, 1, 0], sizes = [1, 1, 1, 4], strides = [1, 1, 1, 1]} : vector<2x2x2x4xf32> to vector<1x1x1x4xf32>
      %159 = vector.shape_cast %158 : vector<1x1x1x4xf32> to vector<1x4xf32>
      %160 = vector.broadcast %157 : f32 to vector<1x4xf32>
      %161 = arith.mulf %160, %159 : vector<1x4xf32>
      %162 = arith.addf %155, %161 : vector<1x4xf32>
      %c18_17 = arith.constant 18 : index
      %163 = arith.index_cast %5 : i32 to index
      %164 = memref.load %arg2[%c18_17, %163] : memref<64x256xf32, #tpu.memory_space<smem>>
      %165 = vector.extract_strided_slice %148 {offsets = [0, 1, 0, 0], sizes = [1, 1, 1, 4], strides = [1, 1, 1, 1]} : vector<2x2x2x4xf32> to vector<1x1x1x4xf32>
      %166 = vector.shape_cast %165 : vector<1x1x1x4xf32> to vector<1x4xf32>
      %167 = vector.broadcast %164 : f32 to vector<1x4xf32>
      %168 = arith.mulf %167, %166 : vector<1x4xf32>
      %169 = arith.addf %162, %168 : vector<1x4xf32>
      %c26 = arith.constant 26 : index
      %170 = arith.index_cast %5 : i32 to index
      %171 = memref.load %arg2[%c26, %170] : memref<64x256xf32, #tpu.memory_space<smem>>
      %172 = vector.extract_strided_slice %148 {offsets = [0, 1, 1, 0], sizes = [1, 1, 1, 4], strides = [1, 1, 1, 1]} : vector<2x2x2x4xf32> to vector<1x1x1x4xf32>
      %173 = vector.shape_cast %172 : vector<1x1x1x4xf32> to vector<1x4xf32>
      %174 = vector.broadcast %171 : f32 to vector<1x4xf32>
      %175 = arith.mulf %174, %173 : vector<1x4xf32>
      %176 = arith.addf %169, %175 : vector<1x4xf32>
      %c34 = arith.constant 34 : index
      %177 = arith.index_cast %5 : i32 to index
      %178 = memref.load %arg2[%c34, %177] : memref<64x256xf32, #tpu.memory_space<smem>>
      %179 = vector.extract_strided_slice %148 {offsets = [1, 0, 0, 0], sizes = [1, 1, 1, 4], strides = [1, 1, 1, 1]} : vector<2x2x2x4xf32> to vector<1x1x1x4xf32>
      %180 = vector.shape_cast %179 : vector<1x1x1x4xf32> to vector<1x4xf32>
      %181 = vector.broadcast %178 : f32 to vector<1x4xf32>
      %182 = arith.mulf %181, %180 : vector<1x4xf32>
      %183 = arith.addf %176, %182 : vector<1x4xf32>
      %c42 = arith.constant 42 : index
      %184 = arith.index_cast %5 : i32 to index
      %185 = memref.load %arg2[%c42, %184] : memref<64x256xf32, #tpu.memory_space<smem>>
      %186 = vector.extract_strided_slice %148 {offsets = [1, 0, 1, 0], sizes = [1, 1, 1, 4], strides = [1, 1, 1, 1]} : vector<2x2x2x4xf32> to vector<1x1x1x4xf32>
      %187 = vector.shape_cast %186 : vector<1x1x1x4xf32> to vector<1x4xf32>
      %188 = vector.broadcast %185 : f32 to vector<1x4xf32>
      %189 = arith.mulf %188, %187 : vector<1x4xf32>
      %190 = arith.addf %183, %189 : vector<1x4xf32>
      %c50 = arith.constant 50 : index
      %191 = arith.index_cast %5 : i32 to index
      %192 = memref.load %arg2[%c50, %191] : memref<64x256xf32, #tpu.memory_space<smem>>
      %193 = vector.extract_strided_slice %148 {offsets = [1, 1, 0, 0], sizes = [1, 1, 1, 4], strides = [1, 1, 1, 1]} : vector<2x2x2x4xf32> to vector<1x1x1x4xf32>
      %194 = vector.shape_cast %193 : vector<1x1x1x4xf32> to vector<1x4xf32>
      %195 = vector.broadcast %192 : f32 to vector<1x4xf32>
      %196 = arith.mulf %195, %194 : vector<1x4xf32>
      %197 = arith.addf %190, %196 : vector<1x4xf32>
      %c58 = arith.constant 58 : index
      %198 = arith.index_cast %5 : i32 to index
      %199 = memref.load %arg2[%c58, %198] : memref<64x256xf32, #tpu.memory_space<smem>>
      %200 = vector.extract_strided_slice %148 {offsets = [1, 1, 1, 0], sizes = [1, 1, 1, 4], strides = [1, 1, 1, 1]} : vector<2x2x2x4xf32> to vector<1x1x1x4xf32>
      %201 = vector.shape_cast %200 : vector<1x1x1x4xf32> to vector<1x4xf32>
      %202 = vector.broadcast %199 : f32 to vector<1x4xf32>
      %203 = arith.mulf %202, %201 : vector<1x4xf32>
      %204 = arith.addf %197, %203 : vector<1x4xf32>
      %c3 = arith.constant 3 : index
      %205 = arith.index_cast %5 : i32 to index
      %206 = memref.load %arg1[%c3, %205] : memref<24x256xi32, #tpu.memory_space<smem>>
      %c11 = arith.constant 11 : index
      %207 = arith.index_cast %5 : i32 to index
      %208 = memref.load %arg1[%c11, %207] : memref<24x256xi32, #tpu.memory_space<smem>>
      %c19 = arith.constant 19 : index
      %209 = arith.index_cast %5 : i32 to index
      %210 = memref.load %arg1[%c19, %209] : memref<24x256xi32, #tpu.memory_space<smem>>
      %211 = arith.index_cast %206 : i32 to index
      %212 = arith.index_cast %208 : i32 to index
      %213 = arith.index_cast %210 : i32 to index
      %c0_18 = arith.constant 0 : index
      %214 = vector.load %arg3[%211, %212, %213, %c0_18] : memref<16x16x16x4xf32, #tpu.memory_space<vmem>>, vector<2x2x2x4xf32>
      %c3_19 = arith.constant 3 : index
      %215 = arith.index_cast %5 : i32 to index
      %216 = memref.load %arg2[%c3_19, %215] : memref<64x256xf32, #tpu.memory_space<smem>>
      %217 = vector.extract_strided_slice %214 {offsets = [0, 0, 0, 0], sizes = [1, 1, 1, 4], strides = [1, 1, 1, 1]} : vector<2x2x2x4xf32> to vector<1x1x1x4xf32>
      %218 = vector.shape_cast %217 : vector<1x1x1x4xf32> to vector<1x4xf32>
      %219 = vector.broadcast %216 : f32 to vector<1x4xf32>
      %220 = arith.mulf %219, %218 : vector<1x4xf32>
      %221 = arith.addf %204, %220 : vector<1x4xf32>
      %c11_20 = arith.constant 11 : index
      %222 = arith.index_cast %5 : i32 to index
      %223 = memref.load %arg2[%c11_20, %222] : memref<64x256xf32, #tpu.memory_space<smem>>
      %224 = vector.extract_strided_slice %214 {offsets = [0, 0, 1, 0], sizes = [1, 1, 1, 4], strides = [1, 1, 1, 1]} : vector<2x2x2x4xf32> to vector<1x1x1x4xf32>
      %225 = vector.shape_cast %224 : vector<1x1x1x4xf32> to vector<1x4xf32>
      %226 = vector.broadcast %223 : f32 to vector<1x4xf32>
      %227 = arith.mulf %226, %225 : vector<1x4xf32>
      %228 = arith.addf %221, %227 : vector<1x4xf32>
      %c19_21 = arith.constant 19 : index
      %229 = arith.index_cast %5 : i32 to index
      %230 = memref.load %arg2[%c19_21, %229] : memref<64x256xf32, #tpu.memory_space<smem>>
      %231 = vector.extract_strided_slice %214 {offsets = [0, 1, 0, 0], sizes = [1, 1, 1, 4], strides = [1, 1, 1, 1]} : vector<2x2x2x4xf32> to vector<1x1x1x4xf32>
      %232 = vector.shape_cast %231 : vector<1x1x1x4xf32> to vector<1x4xf32>
      %233 = vector.broadcast %230 : f32 to vector<1x4xf32>
      %234 = arith.mulf %233, %232 : vector<1x4xf32>
      %235 = arith.addf %228, %234 : vector<1x4xf32>
      %c27 = arith.constant 27 : index
      %236 = arith.index_cast %5 : i32 to index
      %237 = memref.load %arg2[%c27, %236] : memref<64x256xf32, #tpu.memory_space<smem>>
      %238 = vector.extract_strided_slice %214 {offsets = [0, 1, 1, 0], sizes = [1, 1, 1, 4], strides = [1, 1, 1, 1]} : vector<2x2x2x4xf32> to vector<1x1x1x4xf32>
      %239 = vector.shape_cast %238 : vector<1x1x1x4xf32> to vector<1x4xf32>
      %240 = vector.broadcast %237 : f32 to vector<1x4xf32>
      %241 = arith.mulf %240, %239 : vector<1x4xf32>
      %242 = arith.addf %235, %241 : vector<1x4xf32>
      %c35 = arith.constant 35 : index
      %243 = arith.index_cast %5 : i32 to index
      %244 = memref.load %arg2[%c35, %243] : memref<64x256xf32, #tpu.memory_space<smem>>
      %245 = vector.extract_strided_slice %214 {offsets = [1, 0, 0, 0], sizes = [1, 1, 1, 4], strides = [1, 1, 1, 1]} : vector<2x2x2x4xf32> to vector<1x1x1x4xf32>
      %246 = vector.shape_cast %245 : vector<1x1x1x4xf32> to vector<1x4xf32>
      %247 = vector.broadcast %244 : f32 to vector<1x4xf32>
      %248 = arith.mulf %247, %246 : vector<1x4xf32>
      %249 = arith.addf %242, %248 : vector<1x4xf32>
      %c43 = arith.constant 43 : index
      %250 = arith.index_cast %5 : i32 to index
      %251 = memref.load %arg2[%c43, %250] : memref<64x256xf32, #tpu.memory_space<smem>>
      %252 = vector.extract_strided_slice %214 {offsets = [1, 0, 1, 0], sizes = [1, 1, 1, 4], strides = [1, 1, 1, 1]} : vector<2x2x2x4xf32> to vector<1x1x1x4xf32>
      %253 = vector.shape_cast %252 : vector<1x1x1x4xf32> to vector<1x4xf32>
      %254 = vector.broadcast %251 : f32 to vector<1x4xf32>
      %255 = arith.mulf %254, %253 : vector<1x4xf32>
      %256 = arith.addf %249, %255 : vector<1x4xf32>
      %c51 = arith.constant 51 : index
      %257 = arith.index_cast %5 : i32 to index
      %258 = memref.load %arg2[%c51, %257] : memref<64x256xf32, #tpu.memory_space<smem>>
      %259 = vector.extract_strided_slice %214 {offsets = [1, 1, 0, 0], sizes = [1, 1, 1, 4], strides = [1, 1, 1, 1]} : vector<2x2x2x4xf32> to vector<1x1x1x4xf32>
      %260 = vector.shape_cast %259 : vector<1x1x1x4xf32> to vector<1x4xf32>
      %261 = vector.broadcast %258 : f32 to vector<1x4xf32>
      %262 = arith.mulf %261, %260 : vector<1x4xf32>
      %263 = arith.addf %256, %262 : vector<1x4xf32>
      %c59 = arith.constant 59 : index
      %264 = arith.index_cast %5 : i32 to index
      %265 = memref.load %arg2[%c59, %264] : memref<64x256xf32, #tpu.memory_space<smem>>
      %266 = vector.extract_strided_slice %214 {offsets = [1, 1, 1, 0], sizes = [1, 1, 1, 4], strides = [1, 1, 1, 1]} : vector<2x2x2x4xf32> to vector<1x1x1x4xf32>
      %267 = vector.shape_cast %266 : vector<1x1x1x4xf32> to vector<1x4xf32>
      %268 = vector.broadcast %265 : f32 to vector<1x4xf32>
      %269 = arith.mulf %268, %267 : vector<1x4xf32>
      %270 = arith.addf %263, %269 : vector<1x4xf32>
      %c4 = arith.constant 4 : index
      %271 = arith.index_cast %5 : i32 to index
      %272 = memref.load %arg1[%c4, %271] : memref<24x256xi32, #tpu.memory_space<smem>>
      %c12 = arith.constant 12 : index
      %273 = arith.index_cast %5 : i32 to index
      %274 = memref.load %arg1[%c12, %273] : memref<24x256xi32, #tpu.memory_space<smem>>
      %c20 = arith.constant 20 : index
      %275 = arith.index_cast %5 : i32 to index
      %276 = memref.load %arg1[%c20, %275] : memref<24x256xi32, #tpu.memory_space<smem>>
      %277 = arith.index_cast %272 : i32 to index
      %278 = arith.index_cast %274 : i32 to index
      %279 = arith.index_cast %276 : i32 to index
      %c0_22 = arith.constant 0 : index
      %280 = vector.load %arg3[%277, %278, %279, %c0_22] : memref<16x16x16x4xf32, #tpu.memory_space<vmem>>, vector<2x2x2x4xf32>
      %c4_23 = arith.constant 4 : index
      %281 = arith.index_cast %5 : i32 to index
      %282 = memref.load %arg2[%c4_23, %281] : memref<64x256xf32, #tpu.memory_space<smem>>
      %283 = vector.extract_strided_slice %280 {offsets = [0, 0, 0, 0], sizes = [1, 1, 1, 4], strides = [1, 1, 1, 1]} : vector<2x2x2x4xf32> to vector<1x1x1x4xf32>
      %284 = vector.shape_cast %283 : vector<1x1x1x4xf32> to vector<1x4xf32>
      %285 = vector.broadcast %282 : f32 to vector<1x4xf32>
      %286 = arith.mulf %285, %284 : vector<1x4xf32>
      %287 = arith.addf %270, %286 : vector<1x4xf32>
      %c12_24 = arith.constant 12 : index
      %288 = arith.index_cast %5 : i32 to index
      %289 = memref.load %arg2[%c12_24, %288] : memref<64x256xf32, #tpu.memory_space<smem>>
      %290 = vector.extract_strided_slice %280 {offsets = [0, 0, 1, 0], sizes = [1, 1, 1, 4], strides = [1, 1, 1, 1]} : vector<2x2x2x4xf32> to vector<1x1x1x4xf32>
      %291 = vector.shape_cast %290 : vector<1x1x1x4xf32> to vector<1x4xf32>
      %292 = vector.broadcast %289 : f32 to vector<1x4xf32>
      %293 = arith.mulf %292, %291 : vector<1x4xf32>
      %294 = arith.addf %287, %293 : vector<1x4xf32>
      %c20_25 = arith.constant 20 : index
      %295 = arith.index_cast %5 : i32 to index
      %296 = memref.load %arg2[%c20_25, %295] : memref<64x256xf32, #tpu.memory_space<smem>>
      %297 = vector.extract_strided_slice %280 {offsets = [0, 1, 0, 0], sizes = [1, 1, 1, 4], strides = [1, 1, 1, 1]} : vector<2x2x2x4xf32> to vector<1x1x1x4xf32>
      %298 = vector.shape_cast %297 : vector<1x1x1x4xf32> to vector<1x4xf32>
      %299 = vector.broadcast %296 : f32 to vector<1x4xf32>
      %300 = arith.mulf %299, %298 : vector<1x4xf32>
      %301 = arith.addf %294, %300 : vector<1x4xf32>
      %c28 = arith.constant 28 : index
      %302 = arith.index_cast %5 : i32 to index
      %303 = memref.load %arg2[%c28, %302] : memref<64x256xf32, #tpu.memory_space<smem>>
      %304 = vector.extract_strided_slice %280 {offsets = [0, 1, 1, 0], sizes = [1, 1, 1, 4], strides = [1, 1, 1, 1]} : vector<2x2x2x4xf32> to vector<1x1x1x4xf32>
      %305 = vector.shape_cast %304 : vector<1x1x1x4xf32> to vector<1x4xf32>
      %306 = vector.broadcast %303 : f32 to vector<1x4xf32>
      %307 = arith.mulf %306, %305 : vector<1x4xf32>
      %308 = arith.addf %301, %307 : vector<1x4xf32>
      %c36 = arith.constant 36 : index
      %309 = arith.index_cast %5 : i32 to index
      %310 = memref.load %arg2[%c36, %309] : memref<64x256xf32, #tpu.memory_space<smem>>
      %311 = vector.extract_strided_slice %280 {offsets = [1, 0, 0, 0], sizes = [1, 1, 1, 4], strides = [1, 1, 1, 1]} : vector<2x2x2x4xf32> to vector<1x1x1x4xf32>
      %312 = vector.shape_cast %311 : vector<1x1x1x4xf32> to vector<1x4xf32>
      %313 = vector.broadcast %310 : f32 to vector<1x4xf32>
      %314 = arith.mulf %313, %312 : vector<1x4xf32>
      %315 = arith.addf %308, %314 : vector<1x4xf32>
      %c44 = arith.constant 44 : index
      %316 = arith.index_cast %5 : i32 to index
      %317 = memref.load %arg2[%c44, %316] : memref<64x256xf32, #tpu.memory_space<smem>>
      %318 = vector.extract_strided_slice %280 {offsets = [1, 0, 1, 0], sizes = [1, 1, 1, 4], strides = [1, 1, 1, 1]} : vector<2x2x2x4xf32> to vector<1x1x1x4xf32>
      %319 = vector.shape_cast %318 : vector<1x1x1x4xf32> to vector<1x4xf32>
      %320 = vector.broadcast %317 : f32 to vector<1x4xf32>
      %321 = arith.mulf %320, %319 : vector<1x4xf32>
      %322 = arith.addf %315, %321 : vector<1x4xf32>
      %c52 = arith.constant 52 : index
      %323 = arith.index_cast %5 : i32 to index
      %324 = memref.load %arg2[%c52, %323] : memref<64x256xf32, #tpu.memory_space<smem>>
      %325 = vector.extract_strided_slice %280 {offsets = [1, 1, 0, 0], sizes = [1, 1, 1, 4], strides = [1, 1, 1, 1]} : vector<2x2x2x4xf32> to vector<1x1x1x4xf32>
      %326 = vector.shape_cast %325 : vector<1x1x1x4xf32> to vector<1x4xf32>
      %327 = vector.broadcast %324 : f32 to vector<1x4xf32>
      %328 = arith.mulf %327, %326 : vector<1x4xf32>
      %329 = arith.addf %322, %328 : vector<1x4xf32>
      %c60 = arith.constant 60 : index
      %330 = arith.index_cast %5 : i32 to index
      %331 = memref.load %arg2[%c60, %330] : memref<64x256xf32, #tpu.memory_space<smem>>
      %332 = vector.extract_strided_slice %280 {offsets = [1, 1, 1, 0], sizes = [1, 1, 1, 4], strides = [1, 1, 1, 1]} : vector<2x2x2x4xf32> to vector<1x1x1x4xf32>
      %333 = vector.shape_cast %332 : vector<1x1x1x4xf32> to vector<1x4xf32>
      %334 = vector.broadcast %331 : f32 to vector<1x4xf32>
      %335 = arith.mulf %334, %333 : vector<1x4xf32>
      %336 = arith.addf %329, %335 : vector<1x4xf32>
      %c5 = arith.constant 5 : index
      %337 = arith.index_cast %5 : i32 to index
      %338 = memref.load %arg1[%c5, %337] : memref<24x256xi32, #tpu.memory_space<smem>>
      %c13 = arith.constant 13 : index
      %339 = arith.index_cast %5 : i32 to index
      %340 = memref.load %arg1[%c13, %339] : memref<24x256xi32, #tpu.memory_space<smem>>
      %c21 = arith.constant 21 : index
      %341 = arith.index_cast %5 : i32 to index
      %342 = memref.load %arg1[%c21, %341] : memref<24x256xi32, #tpu.memory_space<smem>>
      %343 = arith.index_cast %338 : i32 to index
      %344 = arith.index_cast %340 : i32 to index
      %345 = arith.index_cast %342 : i32 to index
      %c0_26 = arith.constant 0 : index
      %346 = vector.load %arg3[%343, %344, %345, %c0_26] : memref<16x16x16x4xf32, #tpu.memory_space<vmem>>, vector<2x2x2x4xf32>
      %c5_27 = arith.constant 5 : index
      %347 = arith.index_cast %5 : i32 to index
      %348 = memref.load %arg2[%c5_27, %347] : memref<64x256xf32, #tpu.memory_space<smem>>
      %349 = vector.extract_strided_slice %346 {offsets = [0, 0, 0, 0], sizes = [1, 1, 1, 4], strides = [1, 1, 1, 1]} : vector<2x2x2x4xf32> to vector<1x1x1x4xf32>
      %350 = vector.shape_cast %349 : vector<1x1x1x4xf32> to vector<1x4xf32>
      %351 = vector.broadcast %348 : f32 to vector<1x4xf32>
      %352 = arith.mulf %351, %350 : vector<1x4xf32>
      %353 = arith.addf %336, %352 : vector<1x4xf32>
      %c13_28 = arith.constant 13 : index
      %354 = arith.index_cast %5 : i32 to index
      %355 = memref.load %arg2[%c13_28, %354] : memref<64x256xf32, #tpu.memory_space<smem>>
      %356 = vector.extract_strided_slice %346 {offsets = [0, 0, 1, 0], sizes = [1, 1, 1, 4], strides = [1, 1, 1, 1]} : vector<2x2x2x4xf32> to vector<1x1x1x4xf32>
      %357 = vector.shape_cast %356 : vector<1x1x1x4xf32> to vector<1x4xf32>
      %358 = vector.broadcast %355 : f32 to vector<1x4xf32>
      %359 = arith.mulf %358, %357 : vector<1x4xf32>
      %360 = arith.addf %353, %359 : vector<1x4xf32>
      %c21_29 = arith.constant 21 : index
      %361 = arith.index_cast %5 : i32 to index
      %362 = memref.load %arg2[%c21_29, %361] : memref<64x256xf32, #tpu.memory_space<smem>>
      %363 = vector.extract_strided_slice %346 {offsets = [0, 1, 0, 0], sizes = [1, 1, 1, 4], strides = [1, 1, 1, 1]} : vector<2x2x2x4xf32> to vector<1x1x1x4xf32>
      %364 = vector.shape_cast %363 : vector<1x1x1x4xf32> to vector<1x4xf32>
      %365 = vector.broadcast %362 : f32 to vector<1x4xf32>
      %366 = arith.mulf %365, %364 : vector<1x4xf32>
      %367 = arith.addf %360, %366 : vector<1x4xf32>
      %c29 = arith.constant 29 : index
      %368 = arith.index_cast %5 : i32 to index
      %369 = memref.load %arg2[%c29, %368] : memref<64x256xf32, #tpu.memory_space<smem>>
      %370 = vector.extract_strided_slice %346 {offsets = [0, 1, 1, 0], sizes = [1, 1, 1, 4], strides = [1, 1, 1, 1]} : vector<2x2x2x4xf32> to vector<1x1x1x4xf32>
      %371 = vector.shape_cast %370 : vector<1x1x1x4xf32> to vector<1x4xf32>
      %372 = vector.broadcast %369 : f32 to vector<1x4xf32>
      %373 = arith.mulf %372, %371 : vector<1x4xf32>
      %374 = arith.addf %367, %373 : vector<1x4xf32>
      %c37 = arith.constant 37 : index
      %375 = arith.index_cast %5 : i32 to index
      %376 = memref.load %arg2[%c37, %375] : memref<64x256xf32, #tpu.memory_space<smem>>
      %377 = vector.extract_strided_slice %346 {offsets = [1, 0, 0, 0], sizes = [1, 1, 1, 4], strides = [1, 1, 1, 1]} : vector<2x2x2x4xf32> to vector<1x1x1x4xf32>
      %378 = vector.shape_cast %377 : vector<1x1x1x4xf32> to vector<1x4xf32>
      %379 = vector.broadcast %376 : f32 to vector<1x4xf32>
      %380 = arith.mulf %379, %378 : vector<1x4xf32>
      %381 = arith.addf %374, %380 : vector<1x4xf32>
      %c45 = arith.constant 45 : index
      %382 = arith.index_cast %5 : i32 to index
      %383 = memref.load %arg2[%c45, %382] : memref<64x256xf32, #tpu.memory_space<smem>>
      %384 = vector.extract_strided_slice %346 {offsets = [1, 0, 1, 0], sizes = [1, 1, 1, 4], strides = [1, 1, 1, 1]} : vector<2x2x2x4xf32> to vector<1x1x1x4xf32>
      %385 = vector.shape_cast %384 : vector<1x1x1x4xf32> to vector<1x4xf32>
      %386 = vector.broadcast %383 : f32 to vector<1x4xf32>
      %387 = arith.mulf %386, %385 : vector<1x4xf32>
      %388 = arith.addf %381, %387 : vector<1x4xf32>
      %c53 = arith.constant 53 : index
      %389 = arith.index_cast %5 : i32 to index
      %390 = memref.load %arg2[%c53, %389] : memref<64x256xf32, #tpu.memory_space<smem>>
      %391 = vector.extract_strided_slice %346 {offsets = [1, 1, 0, 0], sizes = [1, 1, 1, 4], strides = [1, 1, 1, 1]} : vector<2x2x2x4xf32> to vector<1x1x1x4xf32>
      %392 = vector.shape_cast %391 : vector<1x1x1x4xf32> to vector<1x4xf32>
      %393 = vector.broadcast %390 : f32 to vector<1x4xf32>
      %394 = arith.mulf %393, %392 : vector<1x4xf32>
      %395 = arith.addf %388, %394 : vector<1x4xf32>
      %c61 = arith.constant 61 : index
      %396 = arith.index_cast %5 : i32 to index
      %397 = memref.load %arg2[%c61, %396] : memref<64x256xf32, #tpu.memory_space<smem>>
      %398 = vector.extract_strided_slice %346 {offsets = [1, 1, 1, 0], sizes = [1, 1, 1, 4], strides = [1, 1, 1, 1]} : vector<2x2x2x4xf32> to vector<1x1x1x4xf32>
      %399 = vector.shape_cast %398 : vector<1x1x1x4xf32> to vector<1x4xf32>
      %400 = vector.broadcast %397 : f32 to vector<1x4xf32>
      %401 = arith.mulf %400, %399 : vector<1x4xf32>
      %402 = arith.addf %395, %401 : vector<1x4xf32>
      %c6 = arith.constant 6 : index
      %403 = arith.index_cast %5 : i32 to index
      %404 = memref.load %arg1[%c6, %403] : memref<24x256xi32, #tpu.memory_space<smem>>
      %c14 = arith.constant 14 : index
      %405 = arith.index_cast %5 : i32 to index
      %406 = memref.load %arg1[%c14, %405] : memref<24x256xi32, #tpu.memory_space<smem>>
      %c22 = arith.constant 22 : index
      %407 = arith.index_cast %5 : i32 to index
      %408 = memref.load %arg1[%c22, %407] : memref<24x256xi32, #tpu.memory_space<smem>>
      %409 = arith.index_cast %404 : i32 to index
      %410 = arith.index_cast %406 : i32 to index
      %411 = arith.index_cast %408 : i32 to index
      %c0_30 = arith.constant 0 : index
      %412 = vector.load %arg3[%409, %410, %411, %c0_30] : memref<16x16x16x4xf32, #tpu.memory_space<vmem>>, vector<2x2x2x4xf32>
      %c6_31 = arith.constant 6 : index
      %413 = arith.index_cast %5 : i32 to index
      %414 = memref.load %arg2[%c6_31, %413] : memref<64x256xf32, #tpu.memory_space<smem>>
      %415 = vector.extract_strided_slice %412 {offsets = [0, 0, 0, 0], sizes = [1, 1, 1, 4], strides = [1, 1, 1, 1]} : vector<2x2x2x4xf32> to vector<1x1x1x4xf32>
      %416 = vector.shape_cast %415 : vector<1x1x1x4xf32> to vector<1x4xf32>
      %417 = vector.broadcast %414 : f32 to vector<1x4xf32>
      %418 = arith.mulf %417, %416 : vector<1x4xf32>
      %419 = arith.addf %402, %418 : vector<1x4xf32>
      %c14_32 = arith.constant 14 : index
      %420 = arith.index_cast %5 : i32 to index
      %421 = memref.load %arg2[%c14_32, %420] : memref<64x256xf32, #tpu.memory_space<smem>>
      %422 = vector.extract_strided_slice %412 {offsets = [0, 0, 1, 0], sizes = [1, 1, 1, 4], strides = [1, 1, 1, 1]} : vector<2x2x2x4xf32> to vector<1x1x1x4xf32>
      %423 = vector.shape_cast %422 : vector<1x1x1x4xf32> to vector<1x4xf32>
      %424 = vector.broadcast %421 : f32 to vector<1x4xf32>
      %425 = arith.mulf %424, %423 : vector<1x4xf32>
      %426 = arith.addf %419, %425 : vector<1x4xf32>
      %c22_33 = arith.constant 22 : index
      %427 = arith.index_cast %5 : i32 to index
      %428 = memref.load %arg2[%c22_33, %427] : memref<64x256xf32, #tpu.memory_space<smem>>
      %429 = vector.extract_strided_slice %412 {offsets = [0, 1, 0, 0], sizes = [1, 1, 1, 4], strides = [1, 1, 1, 1]} : vector<2x2x2x4xf32> to vector<1x1x1x4xf32>
      %430 = vector.shape_cast %429 : vector<1x1x1x4xf32> to vector<1x4xf32>
      %431 = vector.broadcast %428 : f32 to vector<1x4xf32>
      %432 = arith.mulf %431, %430 : vector<1x4xf32>
      %433 = arith.addf %426, %432 : vector<1x4xf32>
      %c30 = arith.constant 30 : index
      %434 = arith.index_cast %5 : i32 to index
      %435 = memref.load %arg2[%c30, %434] : memref<64x256xf32, #tpu.memory_space<smem>>
      %436 = vector.extract_strided_slice %412 {offsets = [0, 1, 1, 0], sizes = [1, 1, 1, 4], strides = [1, 1, 1, 1]} : vector<2x2x2x4xf32> to vector<1x1x1x4xf32>
      %437 = vector.shape_cast %436 : vector<1x1x1x4xf32> to vector<1x4xf32>
      %438 = vector.broadcast %435 : f32 to vector<1x4xf32>
      %439 = arith.mulf %438, %437 : vector<1x4xf32>
      %440 = arith.addf %433, %439 : vector<1x4xf32>
      %c38 = arith.constant 38 : index
      %441 = arith.index_cast %5 : i32 to index
      %442 = memref.load %arg2[%c38, %441] : memref<64x256xf32, #tpu.memory_space<smem>>
      %443 = vector.extract_strided_slice %412 {offsets = [1, 0, 0, 0], sizes = [1, 1, 1, 4], strides = [1, 1, 1, 1]} : vector<2x2x2x4xf32> to vector<1x1x1x4xf32>
      %444 = vector.shape_cast %443 : vector<1x1x1x4xf32> to vector<1x4xf32>
      %445 = vector.broadcast %442 : f32 to vector<1x4xf32>
      %446 = arith.mulf %445, %444 : vector<1x4xf32>
      %447 = arith.addf %440, %446 : vector<1x4xf32>
      %c46 = arith.constant 46 : index
      %448 = arith.index_cast %5 : i32 to index
      %449 = memref.load %arg2[%c46, %448] : memref<64x256xf32, #tpu.memory_space<smem>>
      %450 = vector.extract_strided_slice %412 {offsets = [1, 0, 1, 0], sizes = [1, 1, 1, 4], strides = [1, 1, 1, 1]} : vector<2x2x2x4xf32> to vector<1x1x1x4xf32>
      %451 = vector.shape_cast %450 : vector<1x1x1x4xf32> to vector<1x4xf32>
      %452 = vector.broadcast %449 : f32 to vector<1x4xf32>
      %453 = arith.mulf %452, %451 : vector<1x4xf32>
      %454 = arith.addf %447, %453 : vector<1x4xf32>
      %c54 = arith.constant 54 : index
      %455 = arith.index_cast %5 : i32 to index
      %456 = memref.load %arg2[%c54, %455] : memref<64x256xf32, #tpu.memory_space<smem>>
      %457 = vector.extract_strided_slice %412 {offsets = [1, 1, 0, 0], sizes = [1, 1, 1, 4], strides = [1, 1, 1, 1]} : vector<2x2x2x4xf32> to vector<1x1x1x4xf32>
      %458 = vector.shape_cast %457 : vector<1x1x1x4xf32> to vector<1x4xf32>
      %459 = vector.broadcast %456 : f32 to vector<1x4xf32>
      %460 = arith.mulf %459, %458 : vector<1x4xf32>
      %461 = arith.addf %454, %460 : vector<1x4xf32>
      %c62 = arith.constant 62 : index
      %462 = arith.index_cast %5 : i32 to index
      %463 = memref.load %arg2[%c62, %462] : memref<64x256xf32, #tpu.memory_space<smem>>
      %464 = vector.extract_strided_slice %412 {offsets = [1, 1, 1, 0], sizes = [1, 1, 1, 4], strides = [1, 1, 1, 1]} : vector<2x2x2x4xf32> to vector<1x1x1x4xf32>
      %465 = vector.shape_cast %464 : vector<1x1x1x4xf32> to vector<1x4xf32>
      %466 = vector.broadcast %463 : f32 to vector<1x4xf32>
      %467 = arith.mulf %466, %465 : vector<1x4xf32>
      %468 = arith.addf %461, %467 : vector<1x4xf32>
      %c7 = arith.constant 7 : index
      %469 = arith.index_cast %5 : i32 to index
      %470 = memref.load %arg1[%c7, %469] : memref<24x256xi32, #tpu.memory_space<smem>>
      %c15 = arith.constant 15 : index
      %471 = arith.index_cast %5 : i32 to index
      %472 = memref.load %arg1[%c15, %471] : memref<24x256xi32, #tpu.memory_space<smem>>
      %c23 = arith.constant 23 : index
      %473 = arith.index_cast %5 : i32 to index
      %474 = memref.load %arg1[%c23, %473] : memref<24x256xi32, #tpu.memory_space<smem>>
      %475 = arith.index_cast %470 : i32 to index
      %476 = arith.index_cast %472 : i32 to index
      %477 = arith.index_cast %474 : i32 to index
      %c0_34 = arith.constant 0 : index
      %478 = vector.load %arg3[%475, %476, %477, %c0_34] : memref<16x16x16x4xf32, #tpu.memory_space<vmem>>, vector<2x2x2x4xf32>
      %c7_35 = arith.constant 7 : index
      %479 = arith.index_cast %5 : i32 to index
      %480 = memref.load %arg2[%c7_35, %479] : memref<64x256xf32, #tpu.memory_space<smem>>
      %481 = vector.extract_strided_slice %478 {offsets = [0, 0, 0, 0], sizes = [1, 1, 1, 4], strides = [1, 1, 1, 1]} : vector<2x2x2x4xf32> to vector<1x1x1x4xf32>
      %482 = vector.shape_cast %481 : vector<1x1x1x4xf32> to vector<1x4xf32>
      %483 = vector.broadcast %480 : f32 to vector<1x4xf32>
      %484 = arith.mulf %483, %482 : vector<1x4xf32>
      %485 = arith.addf %468, %484 : vector<1x4xf32>
      %c15_36 = arith.constant 15 : index
      %486 = arith.index_cast %5 : i32 to index
      %487 = memref.load %arg2[%c15_36, %486] : memref<64x256xf32, #tpu.memory_space<smem>>
      %488 = vector.extract_strided_slice %478 {offsets = [0, 0, 1, 0], sizes = [1, 1, 1, 4], strides = [1, 1, 1, 1]} : vector<2x2x2x4xf32> to vector<1x1x1x4xf32>
      %489 = vector.shape_cast %488 : vector<1x1x1x4xf32> to vector<1x4xf32>
      %490 = vector.broadcast %487 : f32 to vector<1x4xf32>
      %491 = arith.mulf %490, %489 : vector<1x4xf32>
      %492 = arith.addf %485, %491 : vector<1x4xf32>
      %c23_37 = arith.constant 23 : index
      %493 = arith.index_cast %5 : i32 to index
      %494 = memref.load %arg2[%c23_37, %493] : memref<64x256xf32, #tpu.memory_space<smem>>
      %495 = vector.extract_strided_slice %478 {offsets = [0, 1, 0, 0], sizes = [1, 1, 1, 4], strides = [1, 1, 1, 1]} : vector<2x2x2x4xf32> to vector<1x1x1x4xf32>
      %496 = vector.shape_cast %495 : vector<1x1x1x4xf32> to vector<1x4xf32>
      %497 = vector.broadcast %494 : f32 to vector<1x4xf32>
      %498 = arith.mulf %497, %496 : vector<1x4xf32>
      %499 = arith.addf %492, %498 : vector<1x4xf32>
      %c31 = arith.constant 31 : index
      %500 = arith.index_cast %5 : i32 to index
      %501 = memref.load %arg2[%c31, %500] : memref<64x256xf32, #tpu.memory_space<smem>>
      %502 = vector.extract_strided_slice %478 {offsets = [0, 1, 1, 0], sizes = [1, 1, 1, 4], strides = [1, 1, 1, 1]} : vector<2x2x2x4xf32> to vector<1x1x1x4xf32>
      %503 = vector.shape_cast %502 : vector<1x1x1x4xf32> to vector<1x4xf32>
      %504 = vector.broadcast %501 : f32 to vector<1x4xf32>
      %505 = arith.mulf %504, %503 : vector<1x4xf32>
      %506 = arith.addf %499, %505 : vector<1x4xf32>
      %c39 = arith.constant 39 : index
      %507 = arith.index_cast %5 : i32 to index
      %508 = memref.load %arg2[%c39, %507] : memref<64x256xf32, #tpu.memory_space<smem>>
      %509 = vector.extract_strided_slice %478 {offsets = [1, 0, 0, 0], sizes = [1, 1, 1, 4], strides = [1, 1, 1, 1]} : vector<2x2x2x4xf32> to vector<1x1x1x4xf32>
      %510 = vector.shape_cast %509 : vector<1x1x1x4xf32> to vector<1x4xf32>
      %511 = vector.broadcast %508 : f32 to vector<1x4xf32>
      %512 = arith.mulf %511, %510 : vector<1x4xf32>
      %513 = arith.addf %506, %512 : vector<1x4xf32>
      %c47 = arith.constant 47 : index
      %514 = arith.index_cast %5 : i32 to index
      %515 = memref.load %arg2[%c47, %514] : memref<64x256xf32, #tpu.memory_space<smem>>
      %516 = vector.extract_strided_slice %478 {offsets = [1, 0, 1, 0], sizes = [1, 1, 1, 4], strides = [1, 1, 1, 1]} : vector<2x2x2x4xf32> to vector<1x1x1x4xf32>
      %517 = vector.shape_cast %516 : vector<1x1x1x4xf32> to vector<1x4xf32>
      %518 = vector.broadcast %515 : f32 to vector<1x4xf32>
      %519 = arith.mulf %518, %517 : vector<1x4xf32>
      %520 = arith.addf %513, %519 : vector<1x4xf32>
      %c55 = arith.constant 55 : index
      %521 = arith.index_cast %5 : i32 to index
      %522 = memref.load %arg2[%c55, %521] : memref<64x256xf32, #tpu.memory_space<smem>>
      %523 = vector.extract_strided_slice %478 {offsets = [1, 1, 0, 0], sizes = [1, 1, 1, 4], strides = [1, 1, 1, 1]} : vector<2x2x2x4xf32> to vector<1x1x1x4xf32>
      %524 = vector.shape_cast %523 : vector<1x1x1x4xf32> to vector<1x4xf32>
      %525 = vector.broadcast %522 : f32 to vector<1x4xf32>
      %526 = arith.mulf %525, %524 : vector<1x4xf32>
      %527 = arith.addf %520, %526 : vector<1x4xf32>
      %c63 = arith.constant 63 : index
      %528 = arith.index_cast %5 : i32 to index
      %529 = memref.load %arg2[%c63, %528] : memref<64x256xf32, #tpu.memory_space<smem>>
      %530 = vector.extract_strided_slice %478 {offsets = [1, 1, 1, 0], sizes = [1, 1, 1, 4], strides = [1, 1, 1, 1]} : vector<2x2x2x4xf32> to vector<1x1x1x4xf32>
      %531 = vector.shape_cast %530 : vector<1x1x1x4xf32> to vector<1x4xf32>
      %532 = vector.broadcast %529 : f32 to vector<1x4xf32>
      %533 = arith.mulf %532, %531 : vector<1x4xf32>
      %534 = arith.addf %527, %533 : vector<1x4xf32>
      %535 = arith.index_cast %arg6 : i32 to index
      %c0_38 = arith.constant 0 : index
      %536 = vector.load %arg5[%535, %c0_38] : memref<128x4xf32, #tpu.memory_space<vmem>>, vector<1x4xf32>
      tpu.vector_store %arg5[%535, %c0_38], %534 {strides = array<i32>} : memref<128x4xf32, #tpu.memory_space<vmem>>, vector<1x4xf32>,
    }
    %c128_i32_1 = arith.constant 128 : i32
    %c0 = arith.constant 0 : index
    %c0_2 = arith.constant 0 : index
    %2 = vector.load %arg5[%c0, %c0_2] : memref<128x4xf32, #tpu.memory_space<vmem>>, vector<128x4xf32>
    %3 = tpu.transpose %2, [1, 0] : vector<128x4xf32> -> vector<4x128xf32>
    %c0_3 = arith.constant 0 : index
    %c0_4 = arith.constant 0 : index
    %4 = vector.load %arg4[%c0_3, %c0_4] : memref<4x128xf32, #tpu.memory_space<vmem>>, vector<4x128xf32>
    tpu.vector_store %arg4[%c0_3, %c0_4], %3 {strides = array<i32>} : memref<4x128xf32, #tpu.memory_space<vmem>>, vector<4x128xf32>,
    return
  }
  func.func @transform_0(%arg0: i32) -> (i32, i32) {
    %c0_i32 = arith.constant 0 : i32
    %c0_i32_0 = arith.constant 0 : i32
    %c0_i32_1 = arith.constant 0 : i32
    return %c0_i32, %c0_i32_0 : i32, i32
  }
  func.func @transform_1(%arg0: i32) -> (i32, i32) {
    %c0_i32 = arith.constant 0 : i32
    %c0_i32_0 = arith.constant 0 : i32
    %c0_i32_1 = arith.constant 0 : i32
    return %c0_i32, %c0_i32_0 : i32, i32
  }
  func.func @transform_2(%arg0: i32) -> (i32, i32, i32, i32) {
    %c0_i32 = arith.constant 0 : i32
    %c0_i32_0 = arith.constant 0 : i32
    %c0_i32_1 = arith.constant 0 : i32
    %c0_i32_2 = arith.constant 0 : i32
    %c0_i32_3 = arith.constant 0 : i32
    return %c0_i32, %c0_i32_0, %c0_i32_1, %c0_i32_2 : i32, i32, i32, i32
  }
  func.func @transform_3(%arg0: i32) -> (i32, i32) {
    %c0_i32 = arith.constant 0 : i32
    %c0_i32_0 = arith.constant 0 : i32
    return %c0_i32, %arg0 : i32, i32
  }
}

</mosaic_0001>

<bundles_post_ra>
// kernel: tpu_custom_call.1
= control target key start
LH: loop header
LB: loop body
LE: loop exit
PB: predicated region body
PF: predicated region fallthrough
CT: control target
= control target key end

     0   :  { %s1808_s0 = inlined_call_operand.vmem [shape: s32[24,256], index: 0, kind: input, shape index: {}]   ;;  %s1809_s1 = inlined_call_operand.vmem [shape: f32[64,256], index: 1, kind: input, shape index: {}]   ;;  %s1810_s2 = inlined_call_operand.vmem [shape: f32[16,16,16,4], index: 2, kind: input, shape index: {}]   ;;  %s1811_s3 = inlined_call_operand.hbm [shape: f32[4,256], index: 3, kind: output, shape index: {}]  }
   0x1   :  { %1828 = sst [smem:[#allocation21_spill]] %s1808_s0 }
   0x2   :  { %1829 = sst [smem:[#allocation22_spill]] %s1809_s1 }
   0x3   :  { %1830 = sst [smem:[#allocation23_spill]] %s1811_s3 }
   0x4   :  { %8 = vsyncpa [#allocation5], 0 }
   0x5   :  { %9 = vsyncpa [#allocation7], 0 }
   0x6   :  { %10 = vsyncpa [#allocation4], 0 }
   0x7   :  { %12 = vsyncpa [#allocation4 + $0x1], 0  ;;  %s1163_s12 = smov 0   ;;  %s1165_s13 = smov 0  }
   0x8   :  { %s1167_s14 = smov 0   ;;  %s1169_s15 = smov 0  }
   0x9 LB: > { %1831 = sst [smem:[#allocation12_spill]] %s1120_s12  ;;  %s1184_s16 = sadd.s32 4294967295, %s1132_s15   ;;  %s1132_s15 = sphi %s1169_s15, %s1864_s15   ;;  %s1128_s14 = sphi %s1167_s14, %s1867_s14   ;;  %s1124_s13 = sphi %s1165_s13, %s1866_s13   ;;  %s1120_s12 = sphi %s1163_s12, %s1865_s12  }
   0xa   : > { %1832 = sst [smem:[#allocation13_spill]] %s1124_s13  ;;  %s907_s17 = sadd.s32 4294967294, %s1132_s15  }
   0xb   : > { %1833 = sst [smem:[#allocation14_spill]] %s1128_s14  ;;  %s1188_s18 = sadd.s32 1, %s1132_s15  }
   0xc   : > { %1834 = sst [smem:[#allocation15_spill]] %s1132_s15  ;;  %s88_s19 = sadd.s32 1, %s1128_s14 }
   0xd   : > { %1835 = sst [smem:[#allocation16_spill]] %s1188_s18  ;;  %s85_s20 = ssub.s32 %s1132_s15, %s1188_s18 }
   0xe   : > { %p98_p0 = scmp.ne.s32.totalorder %s1128_s14, %s1124_s13  ;;  %p86_p1 = scmp.eq.s32.totalorder %s85_s20, 0 }
   0xf   : > { %p99_p2 = scmp.eq.s32.totalorder %s1184_s16, 1  ;;  %p104_p3 = scmp.ne.s32.totalorder %s1124_s13, %s1120_s12 }
  0x10   : > { %p105_p4 = scmp.eq.s32.totalorder %s907_s17, 1  ;;  %p908_p7 = scmp.ge.s32.totalorder %s1132_s15, 1 }
  0x11   : > { %s1199_s21 = scalar_select %p86_p1, %s1128_s14, %s88_s19  }
  0x12   : > { %p1201_p5 = por %p99_p2, %p98_p0  ;;  %p1205_p6 = por %p105_p4, %p104_p3 }
  0x13   : > { %1836 = sst [smem:[#allocation17_spill]] %s1199_s21  ;;  %p112_p8 = scmp.lt.s32.totalorder %s1132_s15, 3 }
  0x14   : > { %s1837_s22 = scalar_select %p1201_p5, 1, 0 }
  0x15   : > { %s1839_s23 = scalar_select %p1205_p6, 1, 0 }
  0x16   : > { %1838 = sst [smem:[#allocation18_spill]] %s1837_s22  ;;  %p1812_p9 = scmp.eq.s32.totalorder %s1184_s16, 0 }
  0x17   : > { %1840 = sst [smem:[#allocation19_spill]] %s1839_s23  ;;  %p1212_p10 = pnand %p908_p7, %p112_p8 }
  0x18   : > { %s1842_s0 = sld [smem:[#allocation21_spill]]  ;;  %s1843_s1 = sld [smem:[#allocation22_spill]] }
  0x19   : > { %s1841_s24 = scalar_select %p1212_p10, 1, 0 }
  0x1a   : > { %p968_p11 = pneg %p1212_p10 }
  0x1c   : > { %p1226_p12 = pnand %p1812_p9, %p968_p11 }
  0x1e   : > { %s124_s27 = sshll.u32 %s1842_s0, 4  ;;  %s137_s30 = sshll.u32 %s1843_s1, 4  ;;  %s125_s27 = int_to_ptr.vmem [resolvable:$true] %s124_s27  ;;  %s138_s30 = int_to_ptr.vmem [resolvable:$true] %s137_s30 }
  0x1f   : > { %s1028_s5 = scalar_lea.vmem %s125_s27, 768  ;;  %p1030_p0 = pneg %p1226_p12 }
  0x20   : > { %p1029_p13 = scmp.ne.s32.totalorder %s125_s27, %s1028_s5  ;;  %p1036_p3 = scmp.lt.s32.totalorder %s125_s27, %s125_s27 }
  0x21   : > { %p1037_p4 = scmp.lt.s32.totalorder %s1028_s5, %s1028_s5 }
  0x22   : > { %p1031_p1 = pnand %p1030_p0, %p1029_p13 }
  0x23   : > { %p1038_p7 = por %p1037_p4, %p1036_p3 }
  0x24   : > { %p1032_p2 = pneg %p1031_p1 }
  0x26   : > { %p1039_p8 = pnand %p1038_p7, %p1032_p2 }
  0x28   : > { %1042 = shalt.err (!%p1039_p8)
}
  0x29   : > { %s1138_s6 = smov [#allocation3]   ;;  %s1139_s7 = smov 256  }
  0x2a   : > { %s1140_s8 = smov 16   ;;  %s1043_s9 = scalar_lea.vmem %s138_s30, 2048 }
  0x2b   : > { %971 = dma.vmem_to_smem (!%p1226_p12), %s125_s27, 768, %s1138_s6, [#allocation5], %s1139_s7, %s1139_s7, %s1140_s8  }
  0x2c   : > { %p1044_p11 = scmp.ne.s32.totalorder %s138_s30, %s1043_s9  ;;  %p1051_p13 = scmp.lt.s32.totalorder %s138_s30, %s138_s30 }
  0x2d   : > { %p1052_p1 = scmp.lt.s32.totalorder %s1043_s9, %s1043_s9 }
  0x2e   : > { %p1046_p9 = pnand %p1044_p11, %p1030_p0 }
  0x2f   : > { %p1053_p5 = por %p1052_p1, %p1051_p13 }
  0x30   : > { %p1047_p6 = pneg %p1046_p9 }
  0x32   : > { %p1054_p10 = pnand %p1053_p5, %p1047_p6 }
  0x34   : > { %1057 = shalt.err (!%p1054_p10)
}
  0x35   : > { %s1141_s10 = smov [#allocation6]   ;;  %p1845_p2 = scmp.ne.s32.totalorder %s1841_s24, 0 }
  0x36   : > { %974 = dma.vmem_to_smem (!%p1226_p12), %s138_s30, 2048, %s1141_s10, [#allocation7], %s1139_s7, %s1139_s7, %s1140_s8  }
  0x37   : > { %156 = sbr.rel (%p1845_p2) target bundleno = 373 (0x175), region = 32 }
  0x3e   : > { %p1846_p3 = scmp.eq.s32.totalorder %s1184_s16, 0 }
  0x40   : > { %1107 = dma.done.wait (%p1846_p3), [#allocation5], 768   ;;  %p1847_p4 = pmov %p1846_p3 }
  0x41   : > { %p1848_p9 = pmov %p1846_p3 }
  0x42   : > { %1109 = vsyncadd (%p1847_p4), [#allocation5], 4294966528 }
  0x43   : > { %1111 = dma.done.wait (%p1848_p9), [#allocation7], 2048   ;;  %p1849_p0 = pmov %p1846_p3 }
  0x45   : > { %1113 = vsyncadd (%p1849_p0), [#allocation7], 4294965248 }
  0x46   : > { %166 = sfence }
  0x47   : > { %s1815_s11 = sand.u32 1, %s1124_s13   ;;  %s1259_s24 = smov 0  }
  0x48   : > { %s1256_s19 = sshll.u32 %s1815_s11, 2 }
  0x49   : > { %1850 = sst [smem:[#allocation20_spill]] %s1256_s19 }
  0x4a LB: >> { %s1851_s17 = sshll.u32 %s1184_s16, 7  ;;  %vm727_vm0 = vcmask 24576   ;;  %s1136_s24 = sphi %s1259_s24, %s186_s24  }
  0x4b   : >> { %s187_s25 = sadd.s32 %s1136_s24, %s1851_s17 }
  0x4c   : >> { %s188_s26 = sshra.s32 %s187_s25, 7  ;;  %s1267_s27 = sand.u32 127, %s187_s25 }
  0x4d   : >> { %s1269_s28 = sshll.u32 %s188_s26, 10  ;;  %s1272_s29 = sadd.s32 128, %s1267_s27 }
  0x4e   : >> { %s193_s30 = sadd.s32 %s1269_s28, %s1267_s27  ;;  %s1277_s4 = sadd.s32 2048, %s1269_s28 }
  0x4f   : >> { %s194_s5 = sld [smem:[#allocation3 + %s193_s30]]  ;;  %s197_s6 = sadd.s32 %s1277_s4, %s1267_s27 }
  0x50   : >> { %s198_s7 = sld [smem:[#allocation3 + %s197_s6]]  ;;  %s1282_s8 = sadd.s32 4096, %s1269_s28 }
  0x51   : >> { %s201_s9 = sadd.s32 %s1282_s8, %s1267_s27  ;;  %s212_s10 = sld [smem:[#allocation6 + %s193_s30]] }
  0x52   : >> { %s202_s25 = sld [smem:[#allocation3 + %s201_s9]]  ;;  %s1289_s11 = sadd.s32 6144, %s1269_s28 }
  0x53   : >> { %s216_s26 = sld [smem:[#allocation6 + %s197_s6]]  ;;  %s229_s20 = sadd.s32 %s1289_s11, %s1267_s27 }
  0x54   : >> { %s1286_s17 = sld [smem:[#allocation6 + %s201_s9]]  ;;  %s1294_s0 = sadd.s32 8192, %s1269_s28 }
  0x55   : >> { %s920_s1 = sshll.u32 %s194_s5, 8  ;;  %s230_s21 = sld [smem:[#allocation6 + %s229_s20]] }
  0x56   : >> { %s919_s14 = sshll.u32 %s198_s7, 4  ;;  %s239_s18 = sadd.s32 %s1294_s0, %s1267_s27 }
  0x57   : >> { %s1298_s30 = sld [smem:[#allocation6 + %s239_s18]]  ;;  %s1301_s6 = sadd.s32 10240, %s1269_s28  ;;  %v213_v0 = vstv %s212_s10 }
  0x58   : >> { %s204_s9 = sadd.s32 %s919_s14, %s202_s25  ;;  %s246_s23 = sadd.s32 %s1301_s6, %s1267_s27 }
  0x59   : >> { %s206_s12 = sadd.s32 %s920_s1, %s204_s9  ;;  %v217_v1 = vstv %s216_s26  ;;  %s247_s5 = sld [smem:[#allocation6 + %s246_s23]] }
  0x5a   : >> { %s1308_s7 = scalar_lea.vmem %s1810_s2, %s206_s12  ;;  %s1311_s18 = sadd.s32 12288, %s1269_s28  ;;  %v224_v4 = vstv %s1286_s17 }
  0x5b   : >> { %v208_v2 = vld [vmem:[%s1308_s7] sm:$0x3]  ;;  %v209_v3 = vld [vmem:[%s1308_s7 + $0x10] sm:$0x3]  ;;  %v231_v5 = vstv %s230_s21  ;;  %s256_s1 = sadd.s32 %s1311_s18, %s1267_s27  ;;  %s272_s14 = sadd.s32 %s1269_s28, %s1272_s29 }
  0x5c   : >> { %v214_v6 = vmul.f32 %v213_v0, %v208_v2  ;;  %v218_v7 = vmul.f32 %v217_v1, %v208_v2  ;;  %v232_v8 = vmul.f32 %v231_v5, %v209_v3  ;;  %s1320_s12 = sld [smem:[#allocation6 + %s256_s1]]  ;;  %s1323_s15 = sadd.s32 14336, %s1269_s28  ;;  %v210_v9 = vld [vmem:[%s1308_s7 + $0x100] sm:$0x3]  ;;  %v225_v11 = vmul.f32 %v224_v4, %v209_v3  ;;  %v211_v17 = vld [vmem:[%s1308_s7 + $0x110] sm:$0x3] }
  0x5d   : >> { %s263_s23 = sadd.s32 %s1323_s15, %s1267_s27  ;;  %s1328_s10 = sld [smem:[#allocation3 + %s272_s14]]  ;;  %v241_v12 = vstv %s1298_s30 }
  0x5e   : >> { %v220_v10 = vrot.slane %v218_v7, 1  ;;  %s264_s21 = sld [smem:[#allocation6 + %s263_s23]]  ;;  %s274_s17 = sadd.s32 %s1277_s4, %s1272_s29  ;;  %v234_v15 = vrot.slane %v232_v8, 1  ;;  %v242_v19 = vmul.f32 %v241_v12, %v210_v9 }
  0x5f   : >> { %v248_v13 = vstv %s247_s5  ;;  %s275_s25 = sld [smem:[#allocation3 + %s274_s17]]  ;;  %s276_s26 = sadd.s32 %s1282_s8, %s1272_s29 }
  0x60   : >> { %v222_v14 = vadd.f32 %v220_v10, %v214_v6  ;;  %v249_v16 = vmul.f32 %v248_v13, %v210_v9  ;;  %s277_s9 = sld [smem:[#allocation3 + %s276_s26]]  ;;  %s302_s5 = sadd.s32 %s1289_s11, %s1272_s29 }
  0x61   : >> { %s1335_s20 = sld [smem:[#allocation6 + %s272_s14]]  ;;  %s310_s3 = sadd.s32 %s1294_s0, %s1272_s29 }
  0x62   : >> { %s1337_s1 = sld [smem:[#allocation6 + %s274_s17]]  ;;  %v226_v18 = vadd.f32 %v225_v11, %v222_v14  ;;  %v258_v20 = vstv %s1320_s12  ;;  %v251_v22 = vrot.slane %v249_v16, 1  ;;  %s315_s7 = sadd.s32 %s1301_s6, %s1272_s29 }
  0x63   : >> { %s1340_s30 = sld [smem:[#allocation6 + %s276_s26]]  ;;  %s927_s14 = sshll.u32 %s1328_s10, 8  ;;  %v259_v26 = vmul.f32 %v258_v20, %v211_v17 }
  0x64   : >> { %s1345_s23 = sld [smem:[#allocation6 + %s302_s5]]  ;;  %v236_v21 = vadd.f32 %v234_v15, %v226_v18  ;;  %v265_v23 = vstv %s264_s21  ;;  %s323_s22 = sadd.s32 %s1311_s18, %s1272_s29 }
  0x65   : >> { %v266_v24 = vmul.f32 %v265_v23, %v211_v17  ;;  %s926_s17 = sshll.u32 %s275_s25, 4  ;;  %s1352_s26 = sld [smem:[#allocation6 + %s315_s7]] }
  0x66   : >> { %v243_v25 = vadd.f32 %v242_v19, %v236_v21  ;;  %s279_s12 = sadd.s32 %s926_s17, %s277_s9  ;;  %s1358_s21 = sld [smem:[#allocation6 + %s310_s3]] }
  0x67   : >> { %s281_s5 = sadd.s32 %s927_s14, %s279_s12  ;;  %v288_v27 = vstv %s1335_s20  ;;  %v268_v30 = vrot.slane %v266_v24, 1  ;;  %s328_s9 = sadd.s32 %s1323_s15, %s1272_s29 }
  0x68   : >> { %v292_v28 = vstv %s1337_s1  ;;  %v253_v29 = vadd.f32 %v251_v22, %v243_v25  ;;  %s1363_s7 = scalar_lea.vmem %s1810_s2, %s281_s5  ;;  %s1370_s20 = sld [smem:[#allocation6 + %s323_s22]] }
  0x69   : >> { %v283_v31 = vld [vmem:[%s1363_s7] sm:$0x3]  ;;  %v284_v32 = vld [vmem:[%s1363_s7 + $0x10] sm:$0x3]  ;;  %s1372_s3 = sld [smem:[#allocation6 + %s328_s9]]  ;;  %s1375_s1 = sadd.s32 256, %s1267_s27  ;;  %v299_v37 = vstv %s1340_s30 }
  0x6a   : >> { %v304_v33 = vstv %s1345_s23  ;;  %v260_v34 = vadd.f32 %v259_v26, %v253_v29  ;;  %v289_v35 = vmul.f32 %v288_v27, %v283_v31  ;;  %v293_v36 = vmul.f32 %v292_v28, %v283_v31  ;;  %s337_s29 = sadd.s32 %s1269_s28, %s1375_s1  ;;  %s339_s23 = sadd.s32 %s1277_s4, %s1375_s1  ;;  %v285_v41 = vld [vmem:[%s1363_s7 + $0x100] sm:$0x3]  ;;  %v286_v49 = vld [vmem:[%s1363_s7 + $0x110] sm:$0x3] }
  0x6b   : >> { %v305_v40 = vmul.f32 %v304_v33, %v284_v32  ;;  %s1382_s22 = sld [smem:[#allocation3 + %s337_s29]]  ;;  %v317_v42 = vstv %s1352_s26  ;;  %s341_s17 = sadd.s32 %s1282_s8, %s1375_s1  ;;  %v300_v44 = vmul.f32 %v299_v37, %v284_v32 }
  0x6c   : >> { %v270_v38 = vadd.f32 %v268_v30, %v260_v34  ;;  %v295_v39 = vrot.slane %v293_v36, 1  ;;  %s1384_s14 = sld [smem:[#allocation3 + %s339_s23]]  ;;  %v312_v45 = vstv %s1358_s21  ;;  %s367_s10 = sadd.s32 %s1289_s11, %s1375_s1  ;;  %v318_v48 = vmul.f32 %v317_v42, %v285_v41 }
  0x6d   : >> { %s342_s30 = sld [smem:[#allocation3 + %s341_s17]]  ;;  %v307_v47 = vrot.slane %v305_v40, 1  ;;  %s380_s25 = sadd.s32 %s1301_s6, %s1375_s1  ;;  %v313_v52 = vmul.f32 %v312_v45, %v285_v41 }
  0x6e   : >> { %v290_v43 = vadd.f32 %v289_v35, %v270_v38  ;;  %s1390_s12 = sld [smem:[#allocation6 + %s339_s23]]  ;;  %v325_v53 = vstv %s1370_s20  ;;  %s375_s23 = sadd.s32 %s1294_s0, %s1375_s1  ;;  %v320_v55 = vrot.slane %v318_v48, 1 }
  0x6f   : >> { %s1393_s5 = sld [smem:[#allocation6 + %s337_s29]]  ;;  %v330_v50 = vstv %s1372_s3  ;;  %v326_v59 = vmul.f32 %v325_v53, %v286_v49  ;;  %s1453_s20 = sadd.s32 512, %s1267_s27 }
  0x70   : >> { %v297_v46 = vadd.f32 %v295_v39, %v290_v43  ;;  %s1399_s26 = sld [smem:[#allocation6 + %s367_s10]]  ;;  %v331_v56 = vmul.f32 %v330_v50, %v286_v49 }
  0x71   : >> { %s929_s21 = sshll.u32 %s1382_s22, 8  ;;  %s1406_s29 = sld [smem:[#allocation6 + %s341_s17]] }
  0x72   : >> { %v301_v51 = vadd.f32 %v300_v44, %v297_v46  ;;  %s928_s9 = sshll.u32 %s1384_s14, 4  ;;  %s1410_s3 = sld [smem:[#allocation6 + %s380_s25]]  ;;  %v333_v63 = vrot.slane %v331_v56, 1 }
  0x73   : >> { %s344_s7 = sadd.s32 %s928_s9, %s342_s30  ;;  %s393_s14 = sadd.s32 %s1323_s15, %s1375_s1 }
  0x74   : >> { %v309_v54 = vadd.f32 %v307_v47, %v301_v51  ;;  %s346_s10 = sadd.s32 %s929_s21, %s344_s7  ;;  %v357_v57 = vstv %s1390_s12  ;;  %s1422_s30 = sld [smem:[#allocation6 + %s375_s23]] }
  0x75   : >> { %s1418_s17 = scalar_lea.vmem %s1810_s2, %s346_s10  ;;  %v353_v61 = vstv %s1393_s5  ;;  %s388_s25 = sadd.s32 %s1311_s18, %s1375_s1 }
  0x76   : >> { %v314_v58 = vadd.f32 %v313_v52, %v309_v54  ;;  %v348_v60 = vld [vmem:[%s1418_s17] sm:$0x3]  ;;  %s1426_s12 = sld [smem:[#allocation6 + %s393_s14]]  ;;  %s1429_s9 = sadd.s32 384, %s1267_s27  ;;  %v349_v1 = vld [vmem:[%s1418_s17 + $0x10] sm:$0x3]  ;;  %v369_v2 = vstv %s1399_s26 }
  0x77   : >> { %v358_v0 = vmul.f32 %v357_v57, %v348_v60  ;;  %s402_s5 = sadd.s32 %s1269_s28, %s1429_s9  ;;  %s404_s21 = sadd.s32 %s1277_s4, %s1429_s9  ;;  %v354_v4 = vmul.f32 %v353_v61, %v348_v60  ;;  %v364_v5 = vstv %s1406_s29  ;;  %v370_v8 = vmul.f32 %v369_v2, %v349_v1  ;;  %v350_v9 = vld [vmem:[%s1418_s17 + $0x100] sm:$0x3]  ;;  %v351_v17 = vld [vmem:[%s1418_s17 + $0x110] sm:$0x3] }
  0x78   : >> { %v322_v62 = vadd.f32 %v320_v55, %v314_v58  ;;  %s1437_s1 = sld [smem:[#allocation3 + %s402_s5]]  ;;  %s406_s10 = sadd.s32 %s1282_s8, %s1429_s9  ;;  %v382_v10 = vstv %s1410_s3  ;;  %v365_v12 = vmul.f32 %v364_v5, %v349_v1 }
  0x79   : >> { %s1439_s23 = sld [smem:[#allocation3 + %s404_s21]]  ;;  %v360_v7 = vrot.slane %v358_v0, 1  ;;  %s432_s29 = sadd.s32 %s1289_s11, %s1429_s9  ;;  %v372_v15 = vrot.slane %v370_v8, 1  ;;  %v383_v16 = vmul.f32 %v382_v10, %v350_v9 }
  0x7a   : >> { %v327_v3 = vadd.f32 %v326_v59, %v322_v62  ;;  %s1442_s7 = sld [smem:[#allocation6 + %s388_s25]]  ;;  %v377_v13 = vstv %s1422_s30  ;;  %s445_s25 = sadd.s32 %s1301_s6, %s1429_s9 }
  0x7b   : >> { %s407_s26 = sld [smem:[#allocation3 + %s406_s10]]  ;;  %v378_v20 = vmul.f32 %v377_v13, %v350_v9  ;;  %v385_v23 = vrot.slane %v383_v16, 1 }
  0x7c   : >> { %v335_v6 = vadd.f32 %v333_v63, %v327_v3  ;;  %s1448_s14 = sld [smem:[#allocation6 + %s404_s21]]  ;;  %v395_v18 = vstv %s1426_s12 }
  0x7d   : >> { %s1456_s22 = sld [smem:[#allocation6 + %s402_s5]]  ;;  %s440_s5 = sadd.s32 %s1294_s0, %s1429_s9  ;;  %v396_v24 = vmul.f32 %v395_v18, %v351_v17 }
  0x7e   : >> { %v355_v11 = vadd.f32 %v354_v4, %v335_v6  ;;  %s931_s19 = sshll.u32 %s1437_s1, 8  ;;  %s1464_s3 = sld [smem:[#allocation6 + %s406_s10]] }
  0x7f   : >> { %s930_s13 = sshll.u32 %s1439_s23, 4  ;;  %s1466_s21 = sld [smem:[#allocation6 + %s432_s29]]  ;;  %v398_v31 = vrot.slane %v396_v24, 1 }
  0x80   : >> { %v362_v14 = vadd.f32 %v360_v7, %v355_v11  ;;  %v390_v21 = vstv %s1442_s7  ;;  %s1471_s23 = sld [smem:[#allocation6 + %s445_s25]]  ;;  %s469_s7 = sadd.s32 %s1277_s4, %s1453_s20 }
  0x81   : >> { %s409_s30 = sadd.s32 %s930_s13, %s407_s26  ;;  %s458_s13 = sadd.s32 %s1323_s15, %s1429_s9  ;;  %v391_v28 = vmul.f32 %v390_v21, %v351_v17 }
  0x82   : >> { %v366_v19 = vadd.f32 %v365_v12, %v362_v14  ;;  %s411_s1 = sadd.s32 %s931_s19, %s409_s30  ;;  %v422_v26 = vstv %s1448_s14  ;;  %s1484_s19 = sadd.s32 %s1269_s28, %s1453_s20 }
  0x83   : >> { %s1476_s10 = scalar_lea.vmem %s1810_s2, %s411_s1  ;;  %s1489_s26 = sld [smem:[#allocation3 + %s1484_s19]]  ;;  %v418_v29 = vstv %s1456_s22 }
  0x84   : >> { %v374_v22 = vadd.f32 %v372_v15, %v366_v19  ;;  %v413_v25 = vld [vmem:[%s1476_s10] sm:$0x3]  ;;  %s470_s29 = sld [smem:[#allocation3 + %s469_s7]]  ;;  %s1496_s30 = sadd.s32 %s1282_s8, %s1453_s20  ;;  %v414_v33 = vld [vmem:[%s1476_s10 + $0x10] sm:$0x3]  ;;  %v429_v37 = vstv %s1464_s3 }
  0x85   : >> { %s1492_s25 = sld [smem:[#allocation6 + %s440_s5]]  ;;  %v423_v32 = vmul.f32 %v422_v26, %v413_v25  ;;  %s453_s14 = sadd.s32 %s1311_s18, %s1429_s9  ;;  %v434_v34 = vstv %s1466_s21  ;;  %v419_v36 = vmul.f32 %v418_v29, %v413_v25  ;;  %v415_v41 = vld [vmem:[%s1476_s10 + $0x100] sm:$0x3]  ;;  %v430_v44 = vmul.f32 %v429_v37, %v414_v33  ;;  %v416_v49 = vld [vmem:[%s1476_s10 + $0x110] sm:$0x3] }
  0x86   : >> { %v379_v27 = vadd.f32 %v378_v20, %v374_v22  ;;  %s472_s1 = sld [smem:[#allocation3 + %s1496_s30]]  ;;  %v435_v40 = vmul.f32 %v434_v34, %v414_v33  ;;  %v447_v42 = vstv %s1471_s23  ;;  %s497_s3 = sadd.s32 %s1289_s11, %s1453_s20 }
  0x87   : >> { %s1503_s17 = sld [smem:[#allocation6 + %s458_s13]]  ;;  %v425_v39 = vrot.slane %v423_v32, 1  ;;  %v448_v48 = vmul.f32 %v447_v42, %v415_v41 }
  0x88   : >> { %v387_v30 = vadd.f32 %v385_v23, %v379_v27  ;;  %s1506_s22 = sld [smem:[#allocation6 + %s453_s14]]  ;;  %v437_v47 = vrot.slane %v435_v40, 1  ;;  %s510_s14 = sadd.s32 %s1301_s6, %s1453_s20 }
  0x89   : >> { %s933_s9 = sshll.u32 %s1489_s26, 8  ;;  %s1511_s21 = sld [smem:[#allocation6 + %s469_s7]]  ;;  %v450_v55 = vrot.slane %v448_v48, 1 }
  0x8a   : >> { %v392_v35 = vadd.f32 %v391_v28, %v387_v30  ;;  %s932_s5 = sshll.u32 %s470_s29, 4  ;;  %s1517_s26 = sld [smem:[#allocation6 + %s1484_s19]] }
  0x8b   : >> { %v442_v45 = vstv %s1492_s25  ;;  %s1520_s23 = sld [smem:[#allocation6 + %s1496_s30]]  ;;  %s505_s29 = sadd.s32 %s1294_s0, %s1453_s20 }
  0x8c   : >> { %v400_v38 = vadd.f32 %v398_v31, %v392_v35  ;;  %s474_s12 = sadd.s32 %s932_s5, %s472_s1  ;;  %s1522_s7 = sld [smem:[#allocation6 + %s497_s3]]  ;;  %v443_v52 = vmul.f32 %v442_v45, %v415_v41 }
  0x8d   : >> { %s476_s13 = sadd.s32 %s933_s9, %s474_s12  ;;  %v460_v50 = vstv %s1503_s17  ;;  %s1536_s30 = sadd.s32 640, %s1267_s27 }
  0x8e   : >> { %v420_v43 = vadd.f32 %v419_v36, %v400_v38  ;;  %s1533_s19 = scalar_lea.vmem %s1810_s2, %s476_s13  ;;  %v455_v53 = vstv %s1506_s22  ;;  %s1541_s10 = sadd.s32 %s1269_s28, %s1536_s30  ;;  %v461_v56 = vmul.f32 %v460_v50, %v416_v49 }
  0x8f   : >> { %s1545_s17 = sadd.s32 %s1277_s4, %s1536_s30  ;;  %s1548_s5 = sld [smem:[#allocation3 + %s1541_s10]]  ;;  %v478_v57 = vld [vmem:[%s1533_s19] sm:$0x3]  ;;  %v487_v58 = vstv %s1511_s21  ;;  %v456_v60 = vmul.f32 %v455_v53, %v416_v49  ;;  %v479_v1 = vld [vmem:[%s1533_s19 + $0x10] sm:$0x3] }
  0x90   : >> { %v427_v46 = vadd.f32 %v425_v39, %v420_v43  ;;  %s535_s9 = sld [smem:[#allocation3 + %s1545_s17]]  ;;  %s1557_s3 = sadd.s32 %s1282_s8, %s1536_s30  ;;  %v483_v61 = vstv %s1517_s26  ;;  %v463_v63 = vrot.slane %v461_v56, 1  ;;  %v488_v0 = vmul.f32 %v487_v58, %v478_v57  ;;  %v480_v9 = vld [vmem:[%s1533_s19 + $0x100] sm:$0x3]  ;;  %v481_v17 = vld [vmem:[%s1533_s19 + $0x110] sm:$0x3] }
  0x91   : >> { %s1553_s22 = sld [smem:[#allocation6 + %s510_s14]]  ;;  %s523_s12 = sadd.s32 %s1323_s15, %s1453_s20  ;;  %v484_v4 = vmul.f32 %v483_v61, %v478_v57  ;;  %v494_v5 = vstv %s1520_s23 }
  0x92   : >> { %v431_v51 = vadd.f32 %v430_v44, %v427_v46  ;;  %s537_s13 = sld [smem:[#allocation3 + %s1557_s3]]  ;;  %s518_s21 = sadd.s32 %s1311_s18, %s1453_s20  ;;  %v499_v2 = vstv %s1522_s7  ;;  %v490_v7 = vrot.slane %v488_v0, 1  ;;  %v495_v12 = vmul.f32 %v494_v5, %v479_v1 }
  0x93   : >> { %s1563_s25 = sld [smem:[#allocation6 + %s505_s29]]  ;;  %s1575_s1 = sadd.s32 768, %s1267_s27  ;;  %v500_v8 = vmul.f32 %v499_v2, %v479_v1 }
  0x94   : >> { %v439_v54 = vadd.f32 %v437_v47, %v431_v51  ;;  %s1569_s14 = sld [smem:[#allocation6 + %s523_s12]]  ;;  %s562_s23 = sadd.s32 %s1289_s11, %s1536_s30 }
  0x95   : >> { %s1572_s29 = sld [smem:[#allocation6 + %s518_s21]]  ;;  %s935_s7 = sshll.u32 %s1548_s5, 8  ;;  %v502_v15 = vrot.slane %v500_v8, 1 }
  0x96   : >> { %v444_v59 = vadd.f32 %v443_v52, %v439_v54  ;;  %s934_s26 = sshll.u32 %s535_s9, 4  ;;  %s1581_s9 = sld [smem:[#allocation6 + %s1545_s17]] }
  0x97   : >> { %v512_v10 = vstv %s1553_s22  ;;  %s1586_s12 = sld [smem:[#allocation6 + %s1541_s10]]  ;;  %s1591_s5 = sadd.s32 %s1277_s4, %s1575_s1 }
  0x98   : >> { %v452_v62 = vadd.f32 %v450_v55, %v444_v59  ;;  %s539_s20 = sadd.s32 %s934_s26, %s537_s13  ;;  %v513_v16 = vmul.f32 %v512_v10, %v480_v9  ;;  %s1593_s17 = sld [smem:[#allocation6 + %s562_s23]] }
  0x99   : >> { %v507_v13 = vstv %s1563_s25  ;;  %s541_s13 = sadd.s32 %s935_s7, %s539_s20  ;;  %s1597_s22 = sadd.s32 %s1269_s28, %s1575_s1 }
  0x9a   : >> { %v457_v3 = vadd.f32 %v456_v60, %v452_v62  ;;  %v525_v18 = vstv %s1569_s14  ;;  %s1602_s10 = sld [smem:[#allocation3 + %s1591_s5]]  ;;  %s1606_s25 = sadd.s32 %s1282_s8, %s1575_s1  ;;  %v508_v20 = vmul.f32 %v507_v13, %v480_v9  ;;  %v515_v23 = vrot.slane %v513_v16, 1 }
  0x9b   : >> { %s1611_s20 = scalar_lea.vmem %s1810_s2, %s541_s13  ;;  %s575_s7 = sadd.s32 %s1301_s6, %s1536_s30  ;;  %v520_v21 = vstv %s1572_s29  ;;  %v526_v24 = vmul.f32 %v525_v18, %v481_v17 }
  0x9c   : >> { %v465_v6 = vadd.f32 %v463_v63, %v457_v3  ;;  %s1617_s19 = sld [smem:[#allocation6 + %s1557_s3]]  ;;  %s570_s23 = sadd.s32 %s1294_s0, %s1536_s30  ;;  %v543_v25 = vld [vmem:[%s1611_s20] sm:$0x3]  ;;  %v552_v26 = vstv %s1581_s9  ;;  %v521_v28 = vmul.f32 %v520_v21, %v481_v17  ;;  %v544_v33 = vld [vmem:[%s1611_s20 + $0x10] sm:$0x3] }
  0x9d   : >> { %s1620_s14 = sld [smem:[#allocation3 + %s1597_s22]]  ;;  %s588_s3 = sadd.s32 %s1323_s15, %s1536_s30  ;;  %v548_v29 = vstv %s1586_s12  ;;  %v528_v31 = vrot.slane %v526_v24, 1  ;;  %v553_v32 = vmul.f32 %v552_v26, %v543_v25  ;;  %v545_v41 = vld [vmem:[%s1611_s20 + $0x100] sm:$0x3]  ;;  %v546_v49 = vld [vmem:[%s1611_s20 + $0x110] sm:$0x3] }
  0x9e   : >> { %v485_v11 = vadd.f32 %v484_v4, %v465_v6  ;;  %s602_s21 = sld [smem:[#allocation3 + %s1606_s25]]  ;;  %s583_s26 = sadd.s32 %s1311_s18, %s1536_s30  ;;  %v564_v34 = vstv %s1593_s17  ;;  %v549_v36 = vmul.f32 %v548_v29, %v543_v25 }
  0x9f   : >> { %s1627_s13 = sld [smem:[#allocation6 + %s575_s7]]  ;;  %v555_v39 = vrot.slane %v553_v32, 1  ;;  %v565_v40 = vmul.f32 %v564_v34, %v544_v33  ;;  %s1646_s17 = sadd.s32 896, %s1267_s27 }
  0xa0   : >> { %v492_v14 = vadd.f32 %v490_v7, %v485_v11  ;;  %s1632_s29 = sld [smem:[#allocation6 + %s570_s23]]  ;;  %s936_s7 = sshll.u32 %s1602_s10, 4 }
  0xa1   : >> { %s1638_s9 = sld [smem:[#allocation6 + %s588_s3]]  ;;  %v567_v47 = vrot.slane %v565_v40, 1  ;;  %s1676_s3 = sadd.s32 %s1282_s8, %s1646_s17 }
  0xa2   : >> { %v496_v19 = vadd.f32 %v495_v12, %v492_v14  ;;  %v559_v37 = vstv %s1617_s19  ;;  %s1642_s12 = sld [smem:[#allocation6 + %s583_s26]]  ;;  %s627_s19 = sadd.s32 %s1289_s11, %s1575_s1 }
  0xa3   : >> { %s937_s23 = sshll.u32 %s1620_s14, 8  ;;  %s1651_s10 = sld [smem:[#allocation6 + %s1591_s5]]  ;;  %v560_v44 = vmul.f32 %v559_v37, %v544_v33 }
  0xa4   : >> { %v504_v22 = vadd.f32 %v502_v15, %v496_v19  ;;  %s604_s30 = sadd.s32 %s936_s7, %s602_s21  ;;  %s1657_s14 = sadd.s32 %s1277_s4, %s1646_s17 }
  0xa5   : >> { %v577_v42 = vstv %s1627_s13  ;;  %s606_s27 = sadd.s32 %s937_s23, %s604_s30  ;;  %s1661_s21 = sld [smem:[#allocation6 + %s1597_s22]] }
  0xa6   : >> { %v509_v27 = vadd.f32 %v508_v20, %v504_v22  ;;  %v572_v45 = vstv %s1632_s29  ;;  %v578_v48 = vmul.f32 %v577_v42, %v545_v41  ;;  %s1663_s5 = sld [smem:[#allocation6 + %s627_s19]]  ;;  %s1667_s13 = sadd.s32 %s1269_s28, %s1646_s17 }
  0xa7   : >> { %v590_v50 = vstv %s1638_s9  ;;  %s1672_s4 = sld [smem:[#allocation3 + %s1657_s14]]  ;;  %v573_v52 = vmul.f32 %v572_v45, %v545_v41  ;;  %s1681_s26 = scalar_lea.vmem %s1810_s2, %s606_s27 }
  0xa8   : >> { %v517_v30 = vadd.f32 %v515_v23, %v509_v27  ;;  %s640_s28 = sadd.s32 %s1301_s6, %s1575_s1  ;;  %v585_v53 = vstv %s1642_s12  ;;  %s1687_s20 = sld [smem:[#allocation6 + %s1606_s25]]  ;;  %v580_v55 = vrot.slane %v578_v48, 1  ;;  %v591_v56 = vmul.f32 %v590_v50, %v546_v49  ;;  %v608_v57 = vld [vmem:[%s1681_s26] sm:$0x3]  ;;  %v609_v1 = vld [vmem:[%s1681_s26 + $0x10] sm:$0x3] }
  0xa9   : >> { %s635_s9 = sadd.s32 %s1294_s0, %s1575_s1  ;;  %s1692_s8 = sld [smem:[#allocation3 + %s1667_s13]]  ;;  %v617_v58 = vstv %s1651_s10  ;;  %v586_v60 = vmul.f32 %v585_v53, %v546_v49  ;;  %v610_v9 = vld [vmem:[%s1681_s26 + $0x100] sm:$0x3]  ;;  %v611_v17 = vld [vmem:[%s1681_s26 + $0x110] sm:$0x3] }
  0xaa   : >> { %v522_v35 = vadd.f32 %v521_v28, %v517_v30  ;;  %s667_s7 = sld [smem:[#allocation3 + %s1676_s3]]  ;;  %s653_s25 = sadd.s32 %s1323_s15, %s1575_s1  ;;  %v593_v63 = vrot.slane %v591_v56, 1  ;;  %v618_v0 = vmul.f32 %v617_v58, %v608_v57 }
  0xab   : >> { %s1697_s23 = sld [smem:[#allocation6 + %s640_s28]]  ;;  %v613_v61 = vstv %s1661_s21  ;;  %s648_s30 = sadd.s32 %s1311_s18, %s1575_s1 }
  0xac   : >> { %v530_v38 = vadd.f32 %v528_v31, %v522_v35  ;;  %s1702_s12 = sld [smem:[#allocation6 + %s635_s9]]  ;;  %v629_v2 = vstv %s1663_s5  ;;  %v614_v4 = vmul.f32 %v613_v61, %v608_v57  ;;  %v620_v7 = vrot.slane %v618_v0, 1  ;;  %s700_s26 = sadd.s32 %s1294_s0, %s1646_s17 }
  0xad   : >> { %s1708_s10 = sld [smem:[#allocation6 + %s653_s25]]  ;;  %s938_s19 = sshll.u32 %s1672_s4, 4  ;;  %v630_v8 = vmul.f32 %v629_v2, %v609_v1 }
  0xae   : >> { %v550_v43 = vadd.f32 %v549_v36, %v530_v38  ;;  %v624_v5 = vstv %s1687_s20  ;;  %s1712_s27 = sld [smem:[#allocation6 + %s648_s30]]  ;;  %s692_s4 = sadd.s32 %s1289_s11, %s1646_s17 }
  0xaf   : >> { %s939_s21 = sshll.u32 %s1692_s8, 8  ;;  %s1718_s5 = sld [smem:[#allocation6 + %s1657_s14]]  ;;  %v625_v12 = vmul.f32 %v624_v5, %v609_v1  ;;  %v632_v15 = vrot.slane %v630_v8, 1 }
  0xb0   : >> { %v557_v46 = vadd.f32 %v555_v39, %v550_v43  ;;  %s669_s1 = sadd.s32 %s938_s19, %s667_s7  ;;  %s1724_s29 = sld [smem:[#allocation6 + %s1667_s13]] }
  0xb1   : >> { %v642_v10 = vstv %s1697_s23  ;;  %s671_s22 = sadd.s32 %s939_s21, %s669_s1  ;;  %s1728_s14 = sld [smem:[#allocation6 + %s692_s4]] }
  0xb2   : >> { %v561_v51 = vadd.f32 %v560_v44, %v557_v46  ;;  %v637_v13 = vstv %s1702_s12  ;;  %v643_v16 = vmul.f32 %v642_v10, %v610_v9  ;;  %s1733_s13 = scalar_lea.vmem %s1810_s2, %s671_s22  ;;  %s705_s20 = sadd.s32 %s1301_s6, %s1646_s17 }
  0xb3   : >> { %v655_v18 = vstv %s1708_s10  ;;  %v638_v20 = vmul.f32 %v637_v13, %v610_v9  ;;  %s688_s9 = sld [smem:[#allocation6 + %s1676_s3]]  ;;  %v673_v25 = vld [vmem:[%s1733_s13] sm:$0x3]  ;;  %s718_s7 = sadd.s32 %s1323_s15, %s1646_s17  ;;  %v674_v33 = vld [vmem:[%s1733_s13 + $0x10] sm:$0x3] }
  0xb4   : >> { %v569_v54 = vadd.f32 %v567_v47, %v561_v51  ;;  %v650_v21 = vstv %s1712_s27  ;;  %v645_v23 = vrot.slane %v643_v16, 1  ;;  %v656_v24 = vmul.f32 %v655_v18, %v611_v17  ;;  %s706_s8 = sld [smem:[#allocation6 + %s705_s20]]  ;;  %s713_s6 = sadd.s32 %s1311_s18, %s1646_s17  ;;  %v675_v41 = vld [vmem:[%s1733_s13 + $0x100] sm:$0x3]  ;;  %v676_v49 = vld [vmem:[%s1733_s13 + $0x110] sm:$0x3] }
  0xb5   : >> { %v682_v26 = vstv %s1718_s5  ;;  %v651_v28 = vmul.f32 %v650_v21, %v611_v17  ;;  %s701_s23 = sld [smem:[#allocation6 + %s700_s26]]  ;;  %s726_s18 = scalar_lea.vmem [#allocation2], %s1136_s24 }
  0xb6   : >> { %v574_v59 = vadd.f32 %v573_v52, %v569_v54  ;;  %v678_v29 = vstv %s1724_s29  ;;  %v658_v31 = vrot.slane %v656_v24, 1  ;;  %v683_v32 = vmul.f32 %v682_v26, %v673_v25  ;;  %s719_s3 = sld [smem:[#allocation6 + %s718_s7]]  ;;  %s186_s24 = sadd.s32 1, %s1136_s24  }
  0xb7   : >> { %v694_v34 = vstv %s1728_s14  ;;  %v679_v36 = vmul.f32 %v678_v29, %v673_v25  ;;  %s714_s0 = sld [smem:[#allocation6 + %s713_s6]]  ;;  %p183_p5 = scmp.ge.s32.totalorder %s186_s24, 128  }
  0xb8   : >> { %v582_v62 = vadd.f32 %v580_v55, %v574_v59  ;;  %v685_v39 = vrot.slane %v683_v32, 1  ;;  %v695_v40 = vmul.f32 %v694_v34, %v674_v33  ;;  %s1852_s24 = sld [smem:[#allocation20_spill]] (%p183_p5)  ;;  %s1854_s17 = sld [smem:[#allocation18_spill]] (%p183_p5) }
  0xb9   : >> { %v689_v37 = vstv %s688_s9  ;;  %s1853_s15 = sld [smem:[#allocation13_spill]] (%p183_p5)  ;;  %s941_s25 = sshll.u32 (%p183_p5), %s1184_s16, 6 }
  0xba   : >> { %v587_v3 = vadd.f32 %v586_v60, %v582_v62  ;;  %v707_v42 = vstv %s706_s8  ;;  %v690_v44 = vmul.f32 %v689_v37, %v674_v33  ;;  %v697_v47 = vrot.slane %v695_v40, 1  ;;  %s1856_s27 = sld [smem:[#allocation23_spill]] (%p183_p5)  ;;  %s1142_s16 = smov (%p183_p5), [#allocation8]  }
  0xbb   : >> { %v702_v45 = vstv %s701_s23  ;;  %v708_v48 = vmul.f32 %v707_v42, %v675_v41  ;;  %s1062_s29 = sshll.u32 (%p183_p5), %s1142_s16, 4  ;;  %s1063_s29 = int_to_ptr.vmem [resolvable:$false] %s1062_s29 }
  0xbc   : >> { %v595_v6 = vadd.f32 %v593_v63, %v587_v3  ;;  %v720_v50 = vstv %s719_s3  ;;  %v703_v52 = vmul.f32 %v702_v45, %v675_v41  ;;  %s1064_s14 = scalar_lea.vmem (%p183_p5), %s1063_s29, 128 }
  0xbd   : >> { %v715_v53 = vstv %s714_s0  ;;  %v710_v55 = vrot.slane %v708_v48, 1  ;;  %v721_v56 = vmul.f32 %v720_v50, %v676_v49 }
  0xbe   : >> { %v615_v11 = vadd.f32 %v614_v4, %v595_v6  ;;  %v716_v58 = vmul.f32 %v715_v53, %v676_v49  ;;  %s1855_s12 = scalar_lea.vmem (%p183_p5), [#allocation8], %s1852_s24  ;;  %p1859_p10 = scmp.ne.s32.totalorder (%p183_p5), %s1854_s17, 0 }
  0xbf   : >> { %v723_v60 = vrot.slane %v721_v56, 1  ;;  %s792_s30 = sshll.u32 (%p183_p5), %s1855_s12, 4  ;;  %s1857_s21 = smov (%p183_p5), %s1855_s12  ;;  %s1764_s30 = int_to_ptr.vmem [resolvable:$true] %s792_s30 }
  0xc0   : >> { %v622_v14 = vadd.f32 %v620_v7, %v615_v11  ;;  %s1762_s1 = scalar_lea.hbm (%p183_p5), %s1856_s27, %s941_s25  ;;  %s1858_s5 = sand.u32 (%p183_p5), 1, %s1853_s15  }
  0xc1   : > { %s779_s4 = scalar_lea.sflag (%p183_p5), [#allocation4], %s1858_s5  ;;  %s1058_s22 = scalar_lea.vmem (%p183_p5), %s1764_s30, 64 }
  0xc2   : >> { %v626_v19 = vadd.f32 %v625_v12, %v622_v14  ;;  %p1059_p6 = scmp.ne.s32.totalorder (%p183_p5), %s1764_s30, %s1058_s22  ;;  %p1065_p8 = scmp.lt.s32.totalorder (%p183_p5), %s1764_s30, %s1063_s29 }
  0xc3   : > { %p1066_p11 = scmp.lt.s32.totalorder (%p183_p5), %s1064_s14, %s1058_s22 }
  0xc4   : >> { %v634_v22 = vadd.f32 %v632_v15, %v626_v19  ;;  %p1060_p12 = pnand (%p183_p5), %p1059_p6, %p1859_p10 }
  0xc5   : > { %p1067_p13 = por (%p183_p5), %p1066_p11, %p1065_p8 }
  0xc6   : >> { %v639_v27 = vadd.f32 %v638_v20, %v634_v22  ;;  %p1061_p7 = pneg (%p183_p5), %p1060_p12 }
  0xc8   : >> { %v647_v30 = vadd.f32 %v645_v23, %v639_v27  ;;  %p1068_p1 = pnand (%p183_p5), %p1067_p13, %p1061_p7 }
  0xca   : >> { %v652_v35 = vadd.f32 %v651_v28, %v647_v30 }
  0xcc   : >> { %v660_v38 = vadd.f32 %v658_v31, %v652_v35 }
  0xce   : >> { %v680_v43 = vadd.f32 %v679_v36, %v660_v38 }
  0xd0   : >> { %v687_v46 = vadd.f32 %v685_v39, %v680_v43 }
  0xd2   : >> { %v691_v51 = vadd.f32 %v690_v44, %v687_v46 }
  0xd4   : >> { %v699_v54 = vadd.f32 %v697_v47, %v691_v51 }
  0xd6   : >> { %v704_v57 = vadd.f32 %v703_v52, %v699_v54 }
  0xd8   : >> { %v712_v59 = vadd.f32 %v710_v55, %v704_v57  ;;  %185 = sbr.rel (!%p183_p5) target bundleno = 74 (0x4a), region = 89 }
  0xda   : >> { %v717_v61 = vadd.f32 %v716_v58, %v712_v59 }
  0xdc   : >> { %v725_v62 = vadd.f32 %v723_v60, %v717_v61 }
  0xde   : >> { %728 = vst.msk [vmem:[%s726_s18] sm:$0x1] %vm727_vm0, %v725_v62 }
  0xe5   : > { %v729_v63 = vld [vmem:[#allocation2] sm:$0xff]  ;;  %v730_v0 = vld [vmem:[#allocation2 + $0x8] sm:$0xff]  ;;  %v731_v1 = vld [vmem:[#allocation2 + $0x10] sm:$0xff] }
  0xe6   : > { %745 = vxpose.xlu0.b32.start [1/16] (narrow) %v729_v63, 8  ;;  %v732_v2 = vld [vmem:[#allocation2 + $0x18] sm:$0xff]  ;;  %v733_v3 = vld [vmem:[#allocation2 + $0x20] sm:$0xff]  ;;  %v734_v4 = vld [vmem:[#allocation2 + $0x28] sm:$0xff] }
  0xe7   : > { %v735_v5 = vld [vmem:[#allocation2 + $0x30] sm:$0xff]  ;;  %v736_v6 = vld [vmem:[#allocation2 + $0x38] sm:$0xff]  ;;  %v737_v7 = vld [vmem:[#allocation2 + $0x40] sm:$0xff] }
  0xe8   : > { %v738_v8 = vld [vmem:[#allocation2 + $0x48] sm:$0xff]  ;;  %v739_v9 = vld [vmem:[#allocation2 + $0x50] sm:$0xff]  ;;  %v740_v10 = vld [vmem:[#allocation2 + $0x58] sm:$0xff] }
  0xe9   : > { %v741_v11 = vld [vmem:[#allocation2 + $0x60] sm:$0xff]  ;;  %v742_v12 = vld [vmem:[#allocation2 + $0x68] sm:$0xff]  ;;  %v743_v13 = vld [vmem:[#allocation2 + $0x70] sm:$0xff] }
  0xea   : > { %746 = vxpose.xlu0.b32.cont [2/16] (narrow) %v730_v0, 8  ;;  %v744_v14 = vld [vmem:[#allocation2 + $0x78] sm:$0xff] }
  0xee   : > { %747 = vxpose.xlu0.b32.cont [3/16] (narrow) %v731_v1, 8 }
  0xf2   : > { %748 = vxpose.xlu0.b32.cont [4/16] (narrow) %v732_v2, 8 }
  0xf6   : > { %749 = vxpose.xlu0.b32.cont [5/16] (narrow) %v733_v3, 8 }
  0xfa   : > { %750 = vxpose.xlu0.b32.cont [6/16] (narrow) %v734_v4, 8 }
  0xfe   : > { %751 = vxpose.xlu0.b32.cont [7/16] (narrow) %v735_v5, 8 }
 0x102   : > { %752 = vxpose.xlu0.b32.cont [8/16] (narrow) %v736_v6, 8 }
 0x106   : > { %753 = vxpose.xlu0.b32.cont [9/16] (narrow) %v737_v7, 8 }
 0x10a   : > { %754 = vxpose.xlu0.b32.cont [10/16] (narrow) %v738_v8, 8 }
 0x10e   : > { %755 = vxpose.xlu0.b32.cont [11/16] (narrow) %v739_v9, 8 }
 0x112   : > { %756 = vxpose.xlu0.b32.cont [12/16] (narrow) %v740_v10, 8 }
 0x116   : > { %757 = vxpose.xlu0.b32.cont [13/16] (narrow) %v741_v11, 8 }
 0x11a   : > { %758 = vxpose.xlu0.b32.cont [14/16] (narrow) %v742_v12, 8 }
 0x11e   : > { %759 = vxpose.xlu0.b32.cont [15/16] (narrow) %v743_v13, 8 }
 0x122   : > { %760 = vxpose.xlu0.b32.end [16/16] (narrow) %v744_v14, 8 }
 0x166   : > { %v761_v15 = vpop.trf.xlu0 }
 0x167   : > { %777 = vst [vmem:[%s1857_s21] sm:$0xf] %v761_v15 }
 0x168   : > { %1071 = shalt.err (!%p1068_p1)
}
 0x169   : > { %s1072_s11 = scalar_lea.hbm %s1762_s1, 64  ;;  %s1076_s20 = scalar_lea.hbm %s1856_s27, 128 }
 0x16a   : > { %p1073_p2 = scmp.ne.s32.totalorder %s1762_s1, %s1072_s11  ;;  %p1077_p9 = scmp.lt.u32.totalorder %s1762_s1, %s1856_s27 }
 0x16b   : > { %p1078_p0 = scmp.lt.u32.totalorder %s1076_s20, %s1072_s11  ;;  %p1080_p6 = scmp.lt.u32.totalorder %s1072_s11, %s1762_s1 }
 0x16c   : > { %p1074_p3 = pnand %p1073_p2, %p1859_p10 }
 0x16d   : > { %p1079_p5 = por %p1078_p0, %p1077_p9 }
 0x16e   : > { %p1075_p4 = pneg %p1074_p3 }
 0x16f   : > { %p1081_p12 = por %p1080_p6, %p1079_p5 }
 0x171   : > { %p1082_p7 = pnand %p1081_p12, %p1075_p4 }
 0x173   : > { %1085 = shalt.err (!%p1082_p7)
}
 0x174   : > { %966 = dma.vmem_to_hbm [thread:$0]  (%p1859_p10), %s1764_s30, 64, %s1762_s1, %s779_s4  }
 0x175 PF: > { %s1860_s8 = sld [smem:[#allocation15_spill]]  ;;  %s1861_s7 = sld [smem:[#allocation12_spill]] }
 0x176   : > { %s1862_s23 = sld [smem:[#allocation19_spill]] }
 0x17b   : > { %p983_p8 = scmp.ge.s32.totalorder %s1860_s8, 2  ;;  %s804_s6 = sand.u32 1, %s1861_s7  }
 0x17c   : > { %p1863_p11 = scmp.ne.s32.totalorder %s1862_s23, 0  ;;  %s805_s3 = scalar_lea.sflag [#allocation4], %s804_s6 }
 0x17e   : > { %p976_p13 = pnand %p983_p8, %p1863_p11 }
 0x180   : > { %1115 = dma.done.wait (!%p976_p13), %s805_s3, 64  }
 0x181   : > { %1117 = vsyncadd (!%p976_p13), %s805_s3, 4294967232  ;;  %s1864_s15 = sld [smem:[#allocation16_spill]]  ;;  %s1865_s12 = sld [smem:[#allocation13_spill]] }
 0x182   : > { %s1866_s13 = sld [smem:[#allocation14_spill]]  ;;  %s1867_s14 = sld [smem:[#allocation17_spill]] }
 0x187   : > { %p15_p1 = scmp.ge.s32.totalorder %s1864_s15, 4  }
 0x189   :  { %17 = sbr.rel (!%p15_p1) target bundleno = 9 (0x9), region = 100 }
 0x190   :  { %810 = vsyncpa [#allocation4], 1 }
 0x191   :  { %812 = vsyncpa [#allocation4 + $0x1], 1 }
 0x192   :  { %813 = vsyncpa [#allocation5], 1 }
 0x193   :  { %815 = vsyncpa [#allocation5 + $0x1], 1 }
 0x194   :  { %816 = vsyncpa [#allocation7], 1 }

</bundles_post_ra>
